<compile_context>
chip_gen: v6e
topology: v6e:2x2x1
jax: 0.10.0
libtpu: 0.0.40
codegen_flags: <defaults>
</compile_context>

<pallas_src>
import functools

import jax
import jax.numpy as jnp
from jax.experimental import pallas as pl
from jax.experimental.pallas import tpu as pltpu


def _round_up(x, m):
    return (x + m - 1) // m * m


# Finite "-inf": keeps exp(m_prev - m_new) away from inf-inf NaNs for
# all-masked rows/tiles while still underflowing to exactly 0 after exp.
_NEG_BIG = -1e30


def _edge_softmax_agg_kernel(e_dst_ref, e_src_ref, feat_src_ref, adj_ref,
                             out_ref, m_ref, l_ref, acc_ref,
                             *, num_heads, out_feats, negative_slope):
    """Grid = (dst_tiles [parallel], src_tiles [arbitrary, innermost]).

    Per (i, k) step: online masked edge-softmax update over the (TM, TK)
    adjacency tile for all heads, plus the message aggregation matmul into a
    lane-dense (TM, H*F) accumulator. Finalized (normalize + ReLU) at the last
    src tile.
    """
    k = pl.program_id(1)

    @pl.when(k == 0)
    def _init():
        m_ref[...] = jnp.full_like(m_ref, _NEG_BIG)
        l_ref[...] = jnp.zeros_like(l_ref)
        acc_ref[...] = jnp.zeros_like(acc_ref)

    mask = adj_ref[...] != 0            # (TM, TK) bool (adj DMA'd as int8)
    e_dst = e_dst_ref[...]              # (TM, H)   f32
    e_src = e_src_ref[...]              # (H, TK)   f32
    feat_src = feat_src_ref[...]        # (TK, H*F) f32

    for h in range(num_heads):          # H is small & static -> unrolled
        lo, hi = h * out_feats, (h + 1) * out_feats

        # Edge logits for this head: leaky_relu(e_dst[v] + e_src[u]) on edges.
        s = e_dst[:, h:h + 1] + e_src[h:h + 1, :]                   # (TM, TK)
        s = jnp.where(s > 0, s, negative_slope * s)
        s = jnp.where(mask, s, _NEG_BIG)

        # Online (flash-style) masked softmax update for this src tile.
        m_prev = m_ref[:, h:h + 1]                                  # (TM, 1)
        m_new = jnp.maximum(m_prev, jnp.max(s, axis=-1, keepdims=True))
        alpha = jnp.exp(m_prev - m_new)                             # (TM, 1)
        p = jnp.where(mask, jnp.exp(s - m_new), 0.0)                # (TM, TK)
        l_ref[:, h:h + 1] = alpha * l_ref[:, h:h + 1] + jnp.sum(
            p, axis=-1, keepdims=True)
        m_ref[:, h:h + 1] = m_new

        # Message aggregation on the MXU: acc += p @ feat_src[:, head slice].
        acc_ref[:, lo:hi] = alpha * acc_ref[:, lo:hi] + jnp.dot(
            p, feat_src[:, lo:hi], preferred_element_type=jnp.float32)

    @pl.when(k == pl.num_programs(1) - 1)
    def _finalize():
        for h in range(num_heads):
            lo, hi = h * out_feats, (h + 1) * out_feats
            inv = pl.reciprocal(jnp.maximum(l_ref[:, h:h + 1], 1e-20),
                                approx=True)
            out_ref[:, lo:hi] = jnp.maximum(acc_ref[:, lo:hi] * inv, 0.0)


def relation_graph_conv(x_src, x_dst, w_src, w_dst, rel_attn, adj,
                        num_heads, out_feats, negative_slope=0.2,
                        block_dst=256, block_src=512):
    """x_src: (N_src, D_src), x_dst: (N_dst, D_dst)
       w_src: (D_src, H*F), w_dst: (D_dst, H*F), rel_attn: (H, 2F)
       adj:   (N_dst, N_src), nonzero where an edge dst<-src exists
       returns (N_dst, H*F) float32
    """
    n_src = x_src.shape[0]
    n_dst = x_dst.shape[0]
    H, F = num_heads, out_feats
    HF = H * F
    hi_prec = jax.lax.Precision.HIGHEST

    # --- fused node transforms: ONE wide matmul per side (all heads at once).
    feat_src = jnp.dot(x_src, w_src, precision=hi_prec,
                       preferred_element_type=jnp.float32)          # (N_src, H*F)
    feat_dst = jnp.dot(x_dst, w_dst, precision=hi_prec,
                       preferred_element_type=jnp.float32)          # (N_dst, H*F)

    # Per-node per-head attention logits, computed once (not per tile).
    attn_dst = rel_attn[:, :F].astype(jnp.float32)                  # (H, F)
    attn_src = rel_attn[:, F:].astype(jnp.float32)                  # (H, F)
    e_src = jnp.einsum('nhf,hf->hn', feat_src.reshape(n_src, H, F),
                       attn_src, precision=hi_prec)                 # (H, N_src)
    e_dst = jnp.einsum('nhf,hf->nh', feat_dst.reshape(n_dst, H, F),
                       attn_dst, precision=hi_prec)                 # (N_dst, H)

    # --- tiling & zero padding (tiles satisfy the (8, 128) block constraint).
    tm = min(block_dst, _round_up(n_dst, 8))
    tk = min(block_src, _round_up(n_src, 128))
    n_dst_p = _round_up(n_dst, tm)
    n_src_p = _round_up(n_src, tk)

    feat_src_p = jnp.pad(feat_src, ((0, n_src_p - n_src), (0, 0)))
    e_src_p = jnp.pad(e_src, ((0, 0), (0, n_src_p - n_src)))
    e_dst_p = jnp.pad(e_dst, ((0, n_dst_p - n_dst), (0, 0)))
    # int8 adjacency mask: 4x less HBM->VMEM traffic than f32, and binarized
    # so non-binary inputs behave like the reference where(mask, exp, 0).
    adj_p = jnp.pad((adj != 0).astype(jnp.int8),
                    ((0, n_dst_p - n_dst), (0, n_src_p - n_src)))

    kernel = functools.partial(_edge_softmax_agg_kernel,
                               num_heads=H, out_feats=F,
                               negative_slope=negative_slope)

    out_p = pl.pallas_call(
        kernel,
        out_shape=jax.ShapeDtypeStruct((n_dst_p, HF), jnp.float32),
        grid_spec=pltpu.PrefetchScalarGridSpec(
            num_scalar_prefetch=0,
            grid=(n_dst_p // tm, n_src_p // tk),
            in_specs=[
                pl.BlockSpec((tm, H), lambda i, k: (i, 0)),      # e_dst
                pl.BlockSpec((H, tk), lambda i, k: (0, k)),      # e_src
                pl.BlockSpec((tk, HF), lambda i, k: (k, 0)),     # feat_src
                pl.BlockSpec((tm, tk), lambda i, k: (i, k)),     # adj (int8)
            ],
            out_specs=pl.BlockSpec((tm, HF), lambda i, k: (i, 0)),
            scratch_shapes=[
                pltpu.VMEM((tm, H), jnp.float32),    # running max  m
                pltpu.VMEM((tm, H), jnp.float32),    # running sum  l
                pltpu.VMEM((tm, HF), jnp.float32),   # accumulator  acc
            ]),
        compiler_params=pltpu.CompilerParams(
            dimension_semantics=("parallel", "arbitrary"),
            vmem_limit_bytes=32 * 1024 * 1024),
    )(e_dst_p, e_src_p, feat_src_p, adj_p)

    return out_p[:n_dst]


def _reference(x_src, x_dst, w_src, w_dst, rel_attn, adj, H, F, slope=0.2):
    hi = jax.lax.Precision.HIGHEST
    fs = jnp.dot(x_src, w_src, precision=hi).reshape(-1, H, F)
    fd = jnp.dot(x_dst, w_dst, precision=hi).reshape(-1, H, F)
    e_dst = (fd * rel_attn[:, :F]).sum(-1)           # (N_dst, H)
    e_src = (fs * rel_attn[:, F:]).sum(-1)           # (N_src, H)
    s = e_dst[:, None, :] + e_src[None, :, :]        # (N_dst, N_src, H)
    s = jnp.where(s > 0, s, slope * s)
    mask = adj[:, :, None] > 0
    s = jnp.where(mask, s, -jnp.inf)
    s = s - jnp.max(jnp.where(mask, s, -jnp.inf), axis=1, keepdims=True)
    p = jnp.where(mask, jnp.exp(s), 0.0)
    a = p / jnp.maximum(p.sum(axis=1, keepdims=True), 1e-20)
    out = jnp.einsum('vuh,uhf->vhf', a, fs, precision=hi)
    return jnp.maximum(out.reshape(-1, H * F), 0.0)


if __name__ == "__main__":
    # Small deterministic problem consistent with the module's forward.
    N_SRC, N_DST = 16, 12
    D_SRC, D_DST = 32, 24
    HEADS, OUT_FEATS = 4, 8

    key = jax.random.PRNGKey(0)
    k1, k2, k3, k4, k5, k6 = jax.random.split(key, 6)

    x_src = jax.random.normal(k1, (N_SRC, D_SRC), dtype=jnp.float32)
    x_dst = jax.random.normal(k2, (N_DST, D_DST), dtype=jnp.float32)
    w_src = jax.random.normal(k3, (D_SRC, HEADS * OUT_FEATS), dtype=jnp.float32) * 0.1
    w_dst = jax.random.normal(k4, (D_DST, HEADS * OUT_FEATS), dtype=jnp.float32) * 0.1
    rel_attn = jax.random.normal(k5, (HEADS, 2 * OUT_FEATS), dtype=jnp.float32) * 0.1
    # Dense adjacency mask for the relation subgraph (dst <- src), ~40% density,
    # plus a guaranteed edge per dst so every node has at least one neighbor.
    adj = (jax.random.uniform(k6, (N_DST, N_SRC)) < 0.4).astype(jnp.float32)
    adj = adj.at[jnp.arange(N_DST), jnp.arange(N_DST) % N_SRC].set(1.0)

    out = relation_graph_conv(x_src, x_dst, w_src, w_dst, rel_attn, adj,
                              num_heads=HEADS, out_feats=OUT_FEATS,
                              negative_slope=0.2)
    out = jax.block_until_ready(out)

    ref = _reference(x_src, x_dst, w_src, w_dst, rel_attn, adj,
                     HEADS, OUT_FEATS, slope=0.2)
    assert out.shape == (N_DST, HEADS * OUT_FEATS)
    # Tolerance accounts for the approximate (EUP) reciprocal in the softmax
    # normalization and online-softmax reassociation.
    assert jnp.allclose(out, ref, atol=2e-3, rtol=2e-3), (
        float(jnp.max(jnp.abs(out - ref))))

    print("KERNEL_OK")
</pallas_src>

<mosaic_0001>
module attributes {stable_mosaic.version = 11 : i64} {
  func.func @_edge_softmax_agg_kernel(%arg0: i32, %arg1: i32, %arg2: memref<16x4xf32, #tpu.memory_space<vmem>>, %arg3: memref<4x128xf32, #tpu.memory_space<vmem>>, %arg4: memref<128x32xf32, #tpu.memory_space<vmem>>, %arg5: memref<16x128xi8, #tpu.memory_space<vmem>>, %arg6: memref<16x32xf32, #tpu.memory_space<vmem>>, %arg7: memref<16x4xf32, #tpu.memory_space<vmem>>, %arg8: memref<16x4xf32, #tpu.memory_space<vmem>>, %arg9: memref<16x32xf32, #tpu.memory_space<vmem>>) attributes {dimension_semantics = [#tpu.dimension_semantics<parallel>, #tpu.dimension_semantics<arbitrary>], iteration_bounds = array<i64: 1, 1>, scalar_prefetch = 0 : i64, scratch_operands = 3 : i64, tpu.core_type = #tpu.core_type<tc>, window_params = [{transform_indices = @transform_0, window_bounds = array<i64: 16, 4>}, {transform_indices = @transform_1, window_bounds = array<i64: 4, 128>}, {transform_indices = @transform_2, window_bounds = array<i64: 128, 32>}, {transform_indices = @transform_3, window_bounds = array<i64: 16, 128>}, {transform_indices = @transform_4, window_bounds = array<i64: 16, 32>}]} {
    %c0_i32 = arith.constant 0 : i32
    %0 = arith.cmpi eq, %arg1, %c0_i32 : i32
    %1 = arith.extui %0 : i1 to i32
    %c0_i32_0 = arith.constant 0 : i32
    %2 = arith.cmpi ne, %1, %c0_i32_0 : i32
    scf.if %2 {
      %cst_79 = arith.constant -1.000000e+30 : f32
      %160 = vector.broadcast %cst_79 : f32 to vector<16x4xf32>
      %c0_80 = arith.constant 0 : index
      %c0_81 = arith.constant 0 : index
      %161 = vector.load %arg7[%c0_80, %c0_81] : memref<16x4xf32, #tpu.memory_space<vmem>>, vector<16x4xf32>
      tpu.vector_store %arg7[%c0_80, %c0_81], %160 {strides = array<i32>} : memref<16x4xf32, #tpu.memory_space<vmem>>, vector<16x4xf32>,
      %cst_82 = arith.constant 0.000000e+00 : f32
      %162 = vector.broadcast %cst_82 : f32 to vector<16x4xf32>
      %c0_83 = arith.constant 0 : index
      %c0_84 = arith.constant 0 : index
      %163 = vector.load %arg8[%c0_83, %c0_84] : memref<16x4xf32, #tpu.memory_space<vmem>>, vector<16x4xf32>
      tpu.vector_store %arg8[%c0_83, %c0_84], %162 {strides = array<i32>} : memref<16x4xf32, #tpu.memory_space<vmem>>, vector<16x4xf32>,
      %cst_85 = arith.constant 0.000000e+00 : f32
      %164 = vector.broadcast %cst_85 : f32 to vector<16x32xf32>
      %c0_86 = arith.constant 0 : index
      %c0_87 = arith.constant 0 : index
      %165 = vector.load %arg9[%c0_86, %c0_87] : memref<16x32xf32, #tpu.memory_space<vmem>>, vector<16x32xf32>
      tpu.vector_store %arg9[%c0_86, %c0_87], %164 {strides = array<i32>} : memref<16x32xf32, #tpu.memory_space<vmem>>, vector<16x32xf32>,
    } else {
    }
    %c0 = arith.constant 0 : index
    %c0_1 = arith.constant 0 : index
    %3 = vector.load %arg5[%c0, %c0_1] : memref<16x128xi8, #tpu.memory_space<vmem>>, vector<16x128xi8>
    %c0_i8 = arith.constant 0 : i8
    %4 = vector.broadcast %c0_i8 : i8 to vector<16x128xi8>
    %5 = arith.cmpi ne, %3, %4 : vector<16x128xi8>
    %c0_2 = arith.constant 0 : index
    %c0_3 = arith.constant 0 : index
    %6 = vector.load %arg2[%c0_2, %c0_3] : memref<16x4xf32, #tpu.memory_space<vmem>>, vector<16x4xf32>
    %c0_4 = arith.constant 0 : index
    %c0_5 = arith.constant 0 : index
    %7 = vector.load %arg3[%c0_4, %c0_5] : memref<4x128xf32, #tpu.memory_space<vmem>>, vector<4x128xf32>
    %c0_6 = arith.constant 0 : index
    %c0_7 = arith.constant 0 : index
    %8 = vector.load %arg4[%c0_6, %c0_7] : memref<128x32xf32, #tpu.memory_space<vmem>>, vector<128x32xf32>
    %9 = vector.extract_strided_slice %6 {offsets = [0, 0], sizes = [16, 1], strides = [1, 1]} : vector<16x4xf32> to vector<16x1xf32>
    %10 = vector.extract_strided_slice %7 {offsets = [0, 0], sizes = [1, 128], strides = [1, 1]} : vector<4x128xf32> to vector<1x128xf32>
    %11 = vector.broadcast %9 : vector<16x1xf32> to vector<16x128xf32>
    %12 = vector.broadcast %10 : vector<1x128xf32> to vector<16x128xf32>
    %13 = arith.addf %11, %12 : vector<16x128xf32>
    %cst = arith.constant 0.000000e+00 : f32
    %14 = vector.broadcast %cst : f32 to vector<16x128xf32>
    %15 = arith.cmpf ogt, %13, %14 : vector<16x128xf32>
    %cst_8 = arith.constant 2.000000e-01 : f32
    %16 = vector.broadcast %cst_8 : f32 to vector<16x128xf32>
    %17 = arith.mulf %16, %13 : vector<16x128xf32>
    %18 = arith.select %15, %13, %17 : vector<16x128xi1>, vector<16x128xf32>
    %cst_9 = arith.constant -1.000000e+30 : f32
    %19 = vector.broadcast %cst_9 : f32 to vector<16x128xf32>
    %20 = arith.select %5, %18, %19 : vector<16x128xi1>, vector<16x128xf32>
    %c0_10 = arith.constant 0 : index
    %c0_11 = arith.constant 0 : index
    %21 = vector.load %arg7[%c0_10, %c0_11] : memref<16x4xf32, #tpu.memory_space<vmem>>, vector<16x1xf32>
    %cst_12 = arith.constant dense<0xFF800000> : vector<16xf32>
    %22 = vector.multi_reduction <maximumf>, %20, %cst_12 [1] : vector<16x128xf32> to vector<16xf32>
    %23 = vector.shape_cast %22 : vector<16xf32> to vector<16x1xf32>
    %24 = arith.maximumf %21, %23 : vector<16x1xf32>
    %25 = arith.subf %21, %24 : vector<16x1xf32>
    %26 = math.exp %25 : vector<16x1xf32>
    %27 = vector.broadcast %24 : vector<16x1xf32> to vector<16x128xf32>
    %28 = arith.subf %20, %27 : vector<16x128xf32>
    %29 = math.exp %28 : vector<16x128xf32>
    %cst_13 = arith.constant 0.000000e+00 : f32
    %30 = vector.broadcast %cst_13 : f32 to vector<16x128xf32>
    %31 = arith.select %5, %29, %30 : vector<16x128xi1>, vector<16x128xf32>
    %c0_14 = arith.constant 0 : index
    %c0_15 = arith.constant 0 : index
    %32 = vector.load %arg8[%c0_14, %c0_15] : memref<16x4xf32, #tpu.memory_space<vmem>>, vector<16x1xf32>
    %33 = arith.mulf %26, %32 : vector<16x1xf32>
    %cst_16 = arith.constant dense<0.000000e+00> : vector<16xf32>
    %34 = vector.multi_reduction <add>, %31, %cst_16 [1] : vector<16x128xf32> to vector<16xf32>
    %35 = vector.shape_cast %34 : vector<16xf32> to vector<16x1xf32>
    %36 = arith.addf %33, %35 : vector<16x1xf32>
    %c0_17 = arith.constant 0 : index
    %c0_18 = arith.constant 0 : index
    %37 = vector.load %arg8[%c0_17, %c0_18] : memref<16x4xf32, #tpu.memory_space<vmem>>, vector<16x1xf32>
    tpu.vector_store %arg8[%c0_17, %c0_18], %36 {strides = array<i32>} : memref<16x4xf32, #tpu.memory_space<vmem>>, vector<16x1xf32>,
    %c0_19 = arith.constant 0 : index
    %c0_20 = arith.constant 0 : index
    %38 = vector.load %arg7[%c0_19, %c0_20] : memref<16x4xf32, #tpu.memory_space<vmem>>, vector<16x1xf32>
    tpu.vector_store %arg7[%c0_19, %c0_20], %24 {strides = array<i32>} : memref<16x4xf32, #tpu.memory_space<vmem>>, vector<16x1xf32>,
    %c0_21 = arith.constant 0 : index
    %c0_22 = arith.constant 0 : index
    %39 = vector.load %arg9[%c0_21, %c0_22] : memref<16x32xf32, #tpu.memory_space<vmem>>, vector<16x8xf32>
    %40 = vector.broadcast %26 : vector<16x1xf32> to vector<16x8xf32>
    %41 = arith.mulf %40, %39 : vector<16x8xf32>
    %42 = vector.extract_strided_slice %8 {offsets = [0, 0], sizes = [128, 8], strides = [1, 1]} : vector<128x32xf32> to vector<128x8xf32>
    %cst_23 = arith.constant dense<0.000000e+00> : vector<16x8xf32>
    %43 = tpu.matmul %31, %42, %cst_23 {dimension_numbers = #tpu.dot_dimension_numbers<[1], [0], [0], [1], [0, 0, 1, 1], [], []>} : vector<16x128xf32>, vector<128x8xf32>, vector<16x8xf32> -> vector<16x8xf32>
    %44 = arith.addf %41, %43 : vector<16x8xf32>
    %c0_24 = arith.constant 0 : index
    %c0_25 = arith.constant 0 : index
    %45 = vector.load %arg9[%c0_24, %c0_25] : memref<16x32xf32, #tpu.memory_space<vmem>>, vector<16x8xf32>
    tpu.vector_store %arg9[%c0_24, %c0_25], %44 {strides = array<i32>} : memref<16x32xf32, #tpu.memory_space<vmem>>, vector<16x8xf32>,
    %46 = vector.extract_strided_slice %6 {offsets = [0, 1], sizes = [16, 1], strides = [1, 1]} : vector<16x4xf32> to vector<16x1xf32>
    %47 = vector.extract_strided_slice %7 {offsets = [1, 0], sizes = [1, 128], strides = [1, 1]} : vector<4x128xf32> to vector<1x128xf32>
    %48 = vector.broadcast %46 : vector<16x1xf32> to vector<16x128xf32>
    %49 = vector.broadcast %47 : vector<1x128xf32> to vector<16x128xf32>
    %50 = arith.addf %48, %49 : vector<16x128xf32>
    %cst_26 = arith.constant 0.000000e+00 : f32
    %51 = vector.broadcast %cst_26 : f32 to vector<16x128xf32>
    %52 = arith.cmpf ogt, %50, %51 : vector<16x128xf32>
    %cst_27 = arith.constant 2.000000e-01 : f32
    %53 = vector.broadcast %cst_27 : f32 to vector<16x128xf32>
    %54 = arith.mulf %53, %50 : vector<16x128xf32>
    %55 = arith.select %52, %50, %54 : vector<16x128xi1>, vector<16x128xf32>
    %cst_28 = arith.constant -1.000000e+30 : f32
    %56 = vector.broadcast %cst_28 : f32 to vector<16x128xf32>
    %57 = arith.select %5, %55, %56 : vector<16x128xi1>, vector<16x128xf32>
    %c0_29 = arith.constant 0 : index
    %c1 = arith.constant 1 : index
    %58 = vector.load %arg7[%c0_29, %c1] : memref<16x4xf32, #tpu.memory_space<vmem>>, vector<16x1xf32>
    %cst_30 = arith.constant dense<0xFF800000> : vector<16xf32>
    %59 = vector.multi_reduction <maximumf>, %57, %cst_30 [1] : vector<16x128xf32> to vector<16xf32>
    %60 = vector.shape_cast %59 : vector<16xf32> to vector<16x1xf32>
    %61 = arith.maximumf %58, %60 : vector<16x1xf32>
    %62 = arith.subf %58, %61 : vector<16x1xf32>
    %63 = math.exp %62 : vector<16x1xf32>
    %64 = vector.broadcast %61 : vector<16x1xf32> to vector<16x128xf32>
    %65 = arith.subf %57, %64 : vector<16x128xf32>
    %66 = math.exp %65 : vector<16x128xf32>
    %cst_31 = arith.constant 0.000000e+00 : f32
    %67 = vector.broadcast %cst_31 : f32 to vector<16x128xf32>
    %68 = arith.select %5, %66, %67 : vector<16x128xi1>, vector<16x128xf32>
    %c0_32 = arith.constant 0 : index
    %c1_33 = arith.constant 1 : index
    %69 = vector.load %arg8[%c0_32, %c1_33] : memref<16x4xf32, #tpu.memory_space<vmem>>, vector<16x1xf32>
    %70 = arith.mulf %63, %69 : vector<16x1xf32>
    %cst_34 = arith.constant dense<0.000000e+00> : vector<16xf32>
    %71 = vector.multi_reduction <add>, %68, %cst_34 [1] : vector<16x128xf32> to vector<16xf32>
    %72 = vector.shape_cast %71 : vector<16xf32> to vector<16x1xf32>
    %73 = arith.addf %70, %72 : vector<16x1xf32>
    %c0_35 = arith.constant 0 : index
    %c1_36 = arith.constant 1 : index
    %74 = vector.load %arg8[%c0_35, %c1_36] : memref<16x4xf32, #tpu.memory_space<vmem>>, vector<16x1xf32>
    tpu.vector_store %arg8[%c0_35, %c1_36], %73 {strides = array<i32>} : memref<16x4xf32, #tpu.memory_space<vmem>>, vector<16x1xf32>,
    %c0_37 = arith.constant 0 : index
    %c1_38 = arith.constant 1 : index
    %75 = vector.load %arg7[%c0_37, %c1_38] : memref<16x4xf32, #tpu.memory_space<vmem>>, vector<16x1xf32>
    tpu.vector_store %arg7[%c0_37, %c1_38], %61 {strides = array<i32>} : memref<16x4xf32, #tpu.memory_space<vmem>>, vector<16x1xf32>,
    %c0_39 = arith.constant 0 : index
    %c8 = arith.constant 8 : index
    %76 = vector.load %arg9[%c0_39, %c8] : memref<16x32xf32, #tpu.memory_space<vmem>>, vector<16x8xf32>
    %77 = vector.broadcast %63 : vector<16x1xf32> to vector<16x8xf32>
    %78 = arith.mulf %77, %76 : vector<16x8xf32>
    %79 = vector.extract_strided_slice %8 {offsets = [0, 8], sizes = [128, 8], strides = [1, 1]} : vector<128x32xf32> to vector<128x8xf32>
    %cst_40 = arith.constant dense<0.000000e+00> : vector<16x8xf32>
    %80 = tpu.matmul %68, %79, %cst_40 {dimension_numbers = #tpu.dot_dimension_numbers<[1], [0], [0], [1], [0, 0, 1, 1], [], []>} : vector<16x128xf32>, vector<128x8xf32>, vector<16x8xf32> -> vector<16x8xf32>
    %81 = arith.addf %78, %80 : vector<16x8xf32>
    %c0_41 = arith.constant 0 : index
    %c8_42 = arith.constant 8 : index
    %82 = vector.load %arg9[%c0_41, %c8_42] : memref<16x32xf32, #tpu.memory_space<vmem>>, vector<16x8xf32>
    tpu.vector_store %arg9[%c0_41, %c8_42], %81 {strides = array<i32>} : memref<16x32xf32, #tpu.memory_space<vmem>>, vector<16x8xf32>,
    %83 = vector.extract_strided_slice %6 {offsets = [0, 2], sizes = [16, 1], strides = [1, 1]} : vector<16x4xf32> to vector<16x1xf32>
    %84 = vector.extract_strided_slice %7 {offsets = [2, 0], sizes = [1, 128], strides = [1, 1]} : vector<4x128xf32> to vector<1x128xf32>
    %85 = vector.broadcast %83 : vector<16x1xf32> to vector<16x128xf32>
    %86 = vector.broadcast %84 : vector<1x128xf32> to vector<16x128xf32>
    %87 = arith.addf %85, %86 : vector<16x128xf32>
    %cst_43 = arith.constant 0.000000e+00 : f32
    %88 = vector.broadcast %cst_43 : f32 to vector<16x128xf32>
    %89 = arith.cmpf ogt, %87, %88 : vector<16x128xf32>
    %cst_44 = arith.constant 2.000000e-01 : f32
    %90 = vector.broadcast %cst_44 : f32 to vector<16x128xf32>
    %91 = arith.mulf %90, %87 : vector<16x128xf32>
    %92 = arith.select %89, %87, %91 : vector<16x128xi1>, vector<16x128xf32>
    %cst_45 = arith.constant -1.000000e+30 : f32
    %93 = vector.broadcast %cst_45 : f32 to vector<16x128xf32>
    %94 = arith.select %5, %92, %93 : vector<16x128xi1>, vector<16x128xf32>
    %c0_46 = arith.constant 0 : index
    %c2 = arith.constant 2 : index
    %95 = vector.load %arg7[%c0_46, %c2] : memref<16x4xf32, #tpu.memory_space<vmem>>, vector<16x1xf32>
    %cst_47 = arith.constant dense<0xFF800000> : vector<16xf32>
    %96 = vector.multi_reduction <maximumf>, %94, %cst_47 [1] : vector<16x128xf32> to vector<16xf32>
    %97 = vector.shape_cast %96 : vector<16xf32> to vector<16x1xf32>
    %98 = arith.maximumf %95, %97 : vector<16x1xf32>
    %99 = arith.subf %95, %98 : vector<16x1xf32>
    %100 = math.exp %99 : vector<16x1xf32>
    %101 = vector.broadcast %98 : vector<16x1xf32> to vector<16x128xf32>
    %102 = arith.subf %94, %101 : vector<16x128xf32>
    %103 = math.exp %102 : vector<16x128xf32>
    %cst_48 = arith.constant 0.000000e+00 : f32
    %104 = vector.broadcast %cst_48 : f32 to vector<16x128xf32>
    %105 = arith.select %5, %103, %104 : vector<16x128xi1>, vector<16x128xf32>
    %c0_49 = arith.constant 0 : index
    %c2_50 = arith.constant 2 : index
    %106 = vector.load %arg8[%c0_49, %c2_50] : memref<16x4xf32, #tpu.memory_space<vmem>>, vector<16x1xf32>
    %107 = arith.mulf %100, %106 : vector<16x1xf32>
    %cst_51 = arith.constant dense<0.000000e+00> : vector<16xf32>
    %108 = vector.multi_reduction <add>, %105, %cst_51 [1] : vector<16x128xf32> to vector<16xf32>
    %109 = vector.shape_cast %108 : vector<16xf32> to vector<16x1xf32>
    %110 = arith.addf %107, %109 : vector<16x1xf32>
    %c0_52 = arith.constant 0 : index
    %c2_53 = arith.constant 2 : index
    %111 = vector.load %arg8[%c0_52, %c2_53] : memref<16x4xf32, #tpu.memory_space<vmem>>, vector<16x1xf32>
    tpu.vector_store %arg8[%c0_52, %c2_53], %110 {strides = array<i32>} : memref<16x4xf32, #tpu.memory_space<vmem>>, vector<16x1xf32>,
    %c0_54 = arith.constant 0 : index
    %c2_55 = arith.constant 2 : index
    %112 = vector.load %arg7[%c0_54, %c2_55] : memref<16x4xf32, #tpu.memory_space<vmem>>, vector<16x1xf32>
    tpu.vector_store %arg7[%c0_54, %c2_55], %98 {strides = array<i32>} : memref<16x4xf32, #tpu.memory_space<vmem>>, vector<16x1xf32>,
    %c0_56 = arith.constant 0 : index
    %c16 = arith.constant 16 : index
    %113 = vector.load %arg9[%c0_56, %c16] : memref<16x32xf32, #tpu.memory_space<vmem>>, vector<16x8xf32>
    %114 = vector.broadcast %100 : vector<16x1xf32> to vector<16x8xf32>
    %115 = arith.mulf %114, %113 : vector<16x8xf32>
    %116 = vector.extract_strided_slice %8 {offsets = [0, 16], sizes = [128, 8], strides = [1, 1]} : vector<128x32xf32> to vector<128x8xf32>
    %cst_57 = arith.constant dense<0.000000e+00> : vector<16x8xf32>
    %117 = tpu.matmul %105, %116, %cst_57 {dimension_numbers = #tpu.dot_dimension_numbers<[1], [0], [0], [1], [0, 0, 1, 1], [], []>} : vector<16x128xf32>, vector<128x8xf32>, vector<16x8xf32> -> vector<16x8xf32>
    %118 = arith.addf %115, %117 : vector<16x8xf32>
    %c0_58 = arith.constant 0 : index
    %c16_59 = arith.constant 16 : index
    %119 = vector.load %arg9[%c0_58, %c16_59] : memref<16x32xf32, #tpu.memory_space<vmem>>, vector<16x8xf32>
    tpu.vector_store %arg9[%c0_58, %c16_59], %118 {strides = array<i32>} : memref<16x32xf32, #tpu.memory_space<vmem>>, vector<16x8xf32>,
    %120 = vector.extract_strided_slice %6 {offsets = [0, 3], sizes = [16, 1], strides = [1, 1]} : vector<16x4xf32> to vector<16x1xf32>
    %121 = vector.extract_strided_slice %7 {offsets = [3, 0], sizes = [1, 128], strides = [1, 1]} : vector<4x128xf32> to vector<1x128xf32>
    %122 = vector.broadcast %120 : vector<16x1xf32> to vector<16x128xf32>
    %123 = vector.broadcast %121 : vector<1x128xf32> to vector<16x128xf32>
    %124 = arith.addf %122, %123 : vector<16x128xf32>
    %cst_60 = arith.constant 0.000000e+00 : f32
    %125 = vector.broadcast %cst_60 : f32 to vector<16x128xf32>
    %126 = arith.cmpf ogt, %124, %125 : vector<16x128xf32>
    %cst_61 = arith.constant 2.000000e-01 : f32
    %127 = vector.broadcast %cst_61 : f32 to vector<16x128xf32>
    %128 = arith.mulf %127, %124 : vector<16x128xf32>
    %129 = arith.select %126, %124, %128 : vector<16x128xi1>, vector<16x128xf32>
    %cst_62 = arith.constant -1.000000e+30 : f32
    %130 = vector.broadcast %cst_62 : f32 to vector<16x128xf32>
    %131 = arith.select %5, %129, %130 : vector<16x128xi1>, vector<16x128xf32>
    %c0_63 = arith.constant 0 : index
    %c3 = arith.constant 3 : index
    %132 = vector.load %arg7[%c0_63, %c3] : memref<16x4xf32, #tpu.memory_space<vmem>>, vector<16x1xf32>
    %cst_64 = arith.constant dense<0xFF800000> : vector<16xf32>
    %133 = vector.multi_reduction <maximumf>, %131, %cst_64 [1] : vector<16x128xf32> to vector<16xf32>
    %134 = vector.shape_cast %133 : vector<16xf32> to vector<16x1xf32>
    %135 = arith.maximumf %132, %134 : vector<16x1xf32>
    %136 = arith.subf %132, %135 : vector<16x1xf32>
    %137 = math.exp %136 : vector<16x1xf32>
    %138 = vector.broadcast %135 : vector<16x1xf32> to vector<16x128xf32>
    %139 = arith.subf %131, %138 : vector<16x128xf32>
    %140 = math.exp %139 : vector<16x128xf32>
    %cst_65 = arith.constant 0.000000e+00 : f32
    %141 = vector.broadcast %cst_65 : f32 to vector<16x128xf32>
    %142 = arith.select %5, %140, %141 : vector<16x128xi1>, vector<16x128xf32>
    %c0_66 = arith.constant 0 : index
    %c3_67 = arith.constant 3 : index
    %143 = vector.load %arg8[%c0_66, %c3_67] : memref<16x4xf32, #tpu.memory_space<vmem>>, vector<16x1xf32>
    %144 = arith.mulf %137, %143 : vector<16x1xf32>
    %cst_68 = arith.constant dense<0.000000e+00> : vector<16xf32>
    %145 = vector.multi_reduction <add>, %142, %cst_68 [1] : vector<16x128xf32> to vector<16xf32>
    %146 = vector.shape_cast %145 : vector<16xf32> to vector<16x1xf32>
    %147 = arith.addf %144, %146 : vector<16x1xf32>
    %c0_69 = arith.constant 0 : index
    %c3_70 = arith.constant 3 : index
    %148 = vector.load %arg8[%c0_69, %c3_70] : memref<16x4xf32, #tpu.memory_space<vmem>>, vector<16x1xf32>
    tpu.vector_store %arg8[%c0_69, %c3_70], %147 {strides = array<i32>} : memref<16x4xf32, #tpu.memory_space<vmem>>, vector<16x1xf32>,
    %c0_71 = arith.constant 0 : index
    %c3_72 = arith.constant 3 : index
    %149 = vector.load %arg7[%c0_71, %c3_72] : memref<16x4xf32, #tpu.memory_space<vmem>>, vector<16x1xf32>
    tpu.vector_store %arg7[%c0_71, %c3_72], %135 {strides = array<i32>} : memref<16x4xf32, #tpu.memory_space<vmem>>, vector<16x1xf32>,
    %c0_73 = arith.constant 0 : index
    %c24 = arith.constant 24 : index
    %150 = vector.load %arg9[%c0_73, %c24] : memref<16x32xf32, #tpu.memory_space<vmem>>, vector<16x8xf32>
    %151 = vector.broadcast %137 : vector<16x1xf32> to vector<16x8xf32>
    %152 = arith.mulf %151, %150 : vector<16x8xf32>
    %153 = vector.extract_strided_slice %8 {offsets = [0, 24], sizes = [128, 8], strides = [1, 1]} : vector<128x32xf32> to vector<128x8xf32>
    %cst_74 = arith.constant dense<0.000000e+00> : vector<16x8xf32>
    %154 = tpu.matmul %142, %153, %cst_74 {dimension_numbers = #tpu.dot_dimension_numbers<[1], [0], [0], [1], [0, 0, 1, 1], [], []>} : vector<16x128xf32>, vector<128x8xf32>, vector<16x8xf32> -> vector<16x8xf32>
    %155 = arith.addf %152, %154 : vector<16x8xf32>
    %c0_75 = arith.constant 0 : index
    %c24_76 = arith.constant 24 : index
    %156 = vector.load %arg9[%c0_75, %c24_76] : memref<16x32xf32, #tpu.memory_space<vmem>>, vector<16x8xf32>
    tpu.vector_store %arg9[%c0_75, %c24_76], %155 {strides = array<i32>} : memref<16x32xf32, #tpu.memory_space<vmem>>, vector<16x8xf32>,
    %c0_i32_77 = arith.constant 0 : i32
    %157 = arith.cmpi eq, %arg1, %c0_i32_77 : i32
    %158 = arith.extui %157 : i1 to i32
    %c0_i32_78 = arith.constant 0 : i32
    %159 = arith.cmpi ne, %158, %c0_i32_78 : i32
    scf.if %159 {
      %c0_79 = arith.constant 0 : index
      %c0_80 = arith.constant 0 : index
      %160 = vector.load %arg8[%c0_79, %c0_80] : memref<16x4xf32, #tpu.memory_space<vmem>>, vector<16x1xf32>
      %cst_81 = arith.constant 9.99999968E-21 : f32
      %161 = vector.broadcast %cst_81 : f32 to vector<16x1xf32>
      %162 = arith.maximumf %160, %161 : vector<16x1xf32>
      %163 = tpu.reciprocal %162 {approx = true} : vector<16x1xf32> -> vector<16x1xf32>
      %c0_82 = arith.constant 0 : index
      %c0_83 = arith.constant 0 : index
      %164 = vector.load %arg9[%c0_82, %c0_83] : memref<16x32xf32, #tpu.memory_space<vmem>>, vector<16x8xf32>
      %165 = vector.broadcast %163 : vector<16x1xf32> to vector<16x8xf32>
      %166 = arith.mulf %164, %165 : vector<16x8xf32>
      %cst_84 = arith.constant 0.000000e+00 : f32
      %167 = vector.broadcast %cst_84 : f32 to vector<16x8xf32>
      %168 = arith.maximumf %166, %167 : vector<16x8xf32>
      %c0_85 = arith.constant 0 : index
      %c0_86 = arith.constant 0 : index
      %169 = vector.load %arg6[%c0_85, %c0_86] : memref<16x32xf32, #tpu.memory_space<vmem>>, vector<16x8xf32>
      tpu.vector_store %arg6[%c0_85, %c0_86], %168 {strides = array<i32>} : memref<16x32xf32, #tpu.memory_space<vmem>>, vector<16x8xf32>,
      %c0_87 = arith.constant 0 : index
      %c1_88 = arith.constant 1 : index
      %170 = vector.load %arg8[%c0_87, %c1_88] : memref<16x4xf32, #tpu.memory_space<vmem>>, vector<16x1xf32>
      %cst_89 = arith.constant 9.99999968E-21 : f32
      %171 = vector.broadcast %cst_89 : f32 to vector<16x1xf32>
      %172 = arith.maximumf %170, %171 : vector<16x1xf32>
      %173 = tpu.reciprocal %172 {approx = true} : vector<16x1xf32> -> vector<16x1xf32>
      %c0_90 = arith.constant 0 : index
      %c8_91 = arith.constant 8 : index
      %174 = vector.load %arg9[%c0_90, %c8_91] : memref<16x32xf32, #tpu.memory_space<vmem>>, vector<16x8xf32>
      %175 = vector.broadcast %173 : vector<16x1xf32> to vector<16x8xf32>
      %176 = arith.mulf %174, %175 : vector<16x8xf32>
      %cst_92 = arith.constant 0.000000e+00 : f32
      %177 = vector.broadcast %cst_92 : f32 to vector<16x8xf32>
      %178 = arith.maximumf %176, %177 : vector<16x8xf32>
      %c0_93 = arith.constant 0 : index
      %c8_94 = arith.constant 8 : index
      %179 = vector.load %arg6[%c0_93, %c8_94] : memref<16x32xf32, #tpu.memory_space<vmem>>, vector<16x8xf32>
      tpu.vector_store %arg6[%c0_93, %c8_94], %178 {strides = array<i32>} : memref<16x32xf32, #tpu.memory_space<vmem>>, vector<16x8xf32>,
      %c0_95 = arith.constant 0 : index
      %c2_96 = arith.constant 2 : index
      %180 = vector.load %arg8[%c0_95, %c2_96] : memref<16x4xf32, #tpu.memory_space<vmem>>, vector<16x1xf32>
      %cst_97 = arith.constant 9.99999968E-21 : f32
      %181 = vector.broadcast %cst_97 : f32 to vector<16x1xf32>
      %182 = arith.maximumf %180, %181 : vector<16x1xf32>
      %183 = tpu.reciprocal %182 {approx = true} : vector<16x1xf32> -> vector<16x1xf32>
      %c0_98 = arith.constant 0 : index
      %c16_99 = arith.constant 16 : index
      %184 = vector.load %arg9[%c0_98, %c16_99] : memref<16x32xf32, #tpu.memory_space<vmem>>, vector<16x8xf32>
      %185 = vector.broadcast %183 : vector<16x1xf32> to vector<16x8xf32>
      %186 = arith.mulf %184, %185 : vector<16x8xf32>
      %cst_100 = arith.constant 0.000000e+00 : f32
      %187 = vector.broadcast %cst_100 : f32 to vector<16x8xf32>
      %188 = arith.maximumf %186, %187 : vector<16x8xf32>
      %c0_101 = arith.constant 0 : index
      %c16_102 = arith.constant 16 : index
      %189 = vector.load %arg6[%c0_101, %c16_102] : memref<16x32xf32, #tpu.memory_space<vmem>>, vector<16x8xf32>
      tpu.vector_store %arg6[%c0_101, %c16_102], %188 {strides = array<i32>} : memref<16x32xf32, #tpu.memory_space<vmem>>, vector<16x8xf32>,
      %c0_103 = arith.constant 0 : index
      %c3_104 = arith.constant 3 : index
      %190 = vector.load %arg8[%c0_103, %c3_104] : memref<16x4xf32, #tpu.memory_space<vmem>>, vector<16x1xf32>
      %cst_105 = arith.constant 9.99999968E-21 : f32
      %191 = vector.broadcast %cst_105 : f32 to vector<16x1xf32>
      %192 = arith.maximumf %190, %191 : vector<16x1xf32>
      %193 = tpu.reciprocal %192 {approx = true} : vector<16x1xf32> -> vector<16x1xf32>
      %c0_106 = arith.constant 0 : index
      %c24_107 = arith.constant 24 : index
      %194 = vector.load %arg9[%c0_106, %c24_107] : memref<16x32xf32, #tpu.memory_space<vmem>>, vector<16x8xf32>
      %195 = vector.broadcast %193 : vector<16x1xf32> to vector<16x8xf32>
      %196 = arith.mulf %194, %195 : vector<16x8xf32>
      %cst_108 = arith.constant 0.000000e+00 : f32
      %197 = vector.broadcast %cst_108 : f32 to vector<16x8xf32>
      %198 = arith.maximumf %196, %197 : vector<16x8xf32>
      %c0_109 = arith.constant 0 : index
      %c24_110 = arith.constant 24 : index
      %199 = vector.load %arg6[%c0_109, %c24_110] : memref<16x32xf32, #tpu.memory_space<vmem>>, vector<16x8xf32>
      tpu.vector_store %arg6[%c0_109, %c24_110], %198 {strides = array<i32>} : memref<16x32xf32, #tpu.memory_space<vmem>>, vector<16x8xf32>,
    } else {
    }
    return
  }
  func.func @transform_0(%arg0: i32, %arg1: i32) -> (i32, i32) {
    %c0_i32 = arith.constant 0 : i32
    %c0_i32_0 = arith.constant 0 : i32
    return %arg0, %c0_i32 : i32, i32
  }
  func.func @transform_1(%arg0: i32, %arg1: i32) -> (i32, i32) {
    %c0_i32 = arith.constant 0 : i32
    %c0_i32_0 = arith.constant 0 : i32
    return %c0_i32, %arg1 : i32, i32
  }
  func.func @transform_2(%arg0: i32, %arg1: i32) -> (i32, i32) {
    %c0_i32 = arith.constant 0 : i32
    %c0_i32_0 = arith.constant 0 : i32
    return %arg1, %c0_i32 : i32, i32
  }
  func.func @transform_3(%arg0: i32, %arg1: i32) -> (i32, i32) {
    %c0_i32 = arith.constant 0 : i32
    return %arg0, %arg1 : i32, i32
  }
  func.func @transform_4(%arg0: i32, %arg1: i32) -> (i32, i32) {
    %c0_i32 = arith.constant 0 : i32
    %c0_i32_0 = arith.constant 0 : i32
    return %arg0, %c0_i32 : i32, i32
  }
}

</mosaic_0001>

<bundles_post_ra>
// kernel: tpu_custom_call.1
= control target key start
LH: loop header
LB: loop body
LE: loop exit
PB: predicated region body
PF: predicated region fallthrough
CT: control target
= control target key end

     0   :  { %v1328_v1 = vmov 0   ;;  %v1329_v2 = vmov 1   ;;  %s1896_s0 = inlined_call_operand.vmem [shape: f32[16,4], index: 0, kind: input, shape index: {}]   ;;  %s1897_s1 = inlined_call_operand.vmem [shape: f32[4,128], index: 1, kind: input, shape index: {}]   ;;  %s1898_s2 = inlined_call_operand.vmem [shape: f32[128,32], index: 2, kind: input, shape index: {}]   ;;  %s1899_s3 = inlined_call_operand.vmem [shape: s8[16,128], index: 3, kind: input, shape index: {}]   ;;  %s1900_s4 = inlined_call_operand.hbm [shape: f32[16,32], index: 4, kind: output, shape index: {}]  }
   0x1   :  { %v36_v0 = vld [vmem:[%s1896_s0] sm:$0xff]  ;;  %1248 = vset.pattern.permute.xlu0 %v1328_v1  ;;  %1249 = vset.pattern.permute.xlu1 %v1329_v2  ;;  %v1375_v3 = vld [vmem:[%s1898_s2 + $0x78] sm:$0xff]  ;;  %v37_v4 = vld [vmem:[%s1896_s0 + $0x8] sm:$0xff] }
   0x2   :  { %57 = vperm.xlu0 %1248, %v36_v0   ;;  %227 = vperm.xlu1 %1249, %v36_v0   ;;  %v1384_v5 = vld [vmem:[%s1898_s2 + $0x70] sm:$0xff]  ;;  %v1391_v6 = vld [vmem:[%s1898_s2 + $0x68] sm:$0xff]  ;;  %v1397_v7 = vld [vmem:[%s1898_s2 + $0x60] sm:$0xff] }
   0x3   :  { %1094 = vmatprep.subr.mxu0 %v1375_v3 }
   0x4   :  { %1095 = vmatpush3.msra.mxu0 %v1375_v3 }
   0x5   :  { %1096 = vmatprep.subr.mxu0 %v1384_v5 }
   0x6   :  { %62 = vperm.xlu0 %1248, %v37_v4   ;;  %1097 = vmatpush3.msra.mxu0 %v1384_v5 }
   0x7   :  { %231 = vperm.xlu1 %1249, %v37_v4   ;;  %1098 = vmatprep.subr.mxu0 %v1391_v6 }
   0x8   :  { %9 = vsyncpa [#allocation6], 0  ;;  %1099 = vmatpush3.msra.mxu0 %v1391_v6  ;;  %s1330_s26 = smov 120   ;;  %v1407_v8 = vld [vmem:[%s1898_s2 + $0x58] sm:$0xff]  ;;  %v1331_v9 = vmov 2   ;;  %v1420_v11 = vld [vmem:[%s1898_s2 + $0x50] sm:$0xff]  ;;  %v65_v22 = vlaneseq }
   0x9   :  { %1100 = vmatprep.subr.mxu0 %v1397_v7  ;;  %v1414_v10 = vld [vmem:[%s1898_s2 + $0x38] sm:$0xff]  ;;  %v1427_v12 = vld [vmem:[%s1898_s2 + $0x48] sm:$0xff]  ;;  %v1441_v14 = vld [vmem:[%s1898_s2 + $0x40] sm:$0xff]  ;;  %v1332_v16 = vmov 3   ;;  %s1333_s23 = smov 112   ;;  %vm24_vm8 = vcmask 31744  }
   0xa   :  { %349 = vrot.lane.b32.xlu0 %v1397_v7, %s1330_s26  ;;  %1101 = vmatpush3.msra.mxu0 %v1397_v7  ;;  %v1435_v13 = vld [vmem:[%s1898_s2 + $0x28] sm:$0xff]  ;;  %v1451_v15 = vld [vmem:[%s1898_s2 + $0x20] sm:$0xff]  ;;  %v1458_v17 = vld [vmem:[%s1898_s2 + $0x30] sm:$0xff]  ;;  %v1524_v23 = vshrl.u32 %v65_v22, 7  ;;  %v1334_v54 = vmov -1e+30  }
   0xb   :  { %1250 = vset.pattern.permute.xlu1 %v1331_v9  ;;  %1102 = vmatprep.subr.mxu0 %v1407_v8  ;;  %v1468_v18 = vld [vmem:[%s1898_s2 + $0x18] sm:$0xff]  ;;  %v1479_v19 = vld [vmem:[%s1898_s2 + $0x10] sm:$0xff]  ;;  %v1491_v20 = vld [vmem:[%s1898_s2 + $0x8] sm:$0xff]  ;;  %25 = vst.msk [vmem:[#allocation2] sm:$0xff] %vm24_vm8, %v1334_v54  ;;  %v1335_v63 = vmov 0.0   ;;  %vm127_vm13 = vcmask 7168  }
   0xc   :  { %462 = vperm.xlu1 %1250, %v36_v0   ;;  %1103 = vmatpush3.msra.mxu0 %v1407_v8  ;;  %v1520_v21 = vld [vmem:[%s1898_s2] sm:$0xff]  ;;  %v67_v25 = vsub.s32 0, %v1524_v23  ;;  %v236_v28 = vsub.s32 1, %v1524_v23  ;;  %26 = vst.msk [vmem:[#allocation2 + $0x8] sm:$0xff] %vm24_vm8, %v1334_v54  ;;  %27 = vst.msk [vmem:[#allocation3] sm:$0xff] %vm24_vm8, %v1335_v63  ;;  %vm290_vm14 = vcmask 15368  }
   0xd   :  { %1104 = vmatprep.subr.mxu0 %v1420_v11  ;;  %v32_v24 = vld [vmem:[%s1899_s3] sm:$0x3]  ;;  %v33_v26 = vld [vmem:[%s1899_s3 + $0x2] sm:$0x3]  ;;  %28 = vst.msk [vmem:[#allocation3 + $0x8] sm:$0xff] %vm24_vm8, %v1335_v63  ;;  %vm525_vm15 = vcmask 23568  }
   0xe   :  { %339 = vrot.lane.b32.xlu0 %v1414_v10, %s1330_s26  ;;  %1105 = vmatpush3.msra.mxu0 %v1420_v11  ;;  %vm34_vm0 = vnez %v32_v24  ;;  %v1536_v27 = vld [vmem:[%s1897_s1] sm:$0xf]  ;;  %vm35_vm1 = vnez %v33_v26  ;;  %s1336_s1 = smov 104   ;;  %s1337_s3 = smov 8  }
   0xf   :  { %1106 = vmatprep.subr.mxu0 %v1427_v12  ;;  %v77_v29 = vsel %vm34_vm0, 16843009, %v1328_v1  ;;  %v68_v30 = vrot.slane %v1536_v27, %v67_v25  ;;  %v237_v31 = vrot.slane %v1536_v27, %v236_v28  ;;  %v78_v33 = vsel %vm35_vm1, 16843009, %v1328_v1  ;;  %s1339_s5 = smov 24   ;;  %s1340_s6 = smov [#allocation5]  }
  0x10   :  { %466 = vperm.xlu1 %1250, %v37_v4   ;;  %1107 = vmatpush3.msra.mxu0 %v1427_v12  ;;  %v79_v32 = vunpack.c.0.s8 %v77_v29  ;;  %v80_v38 = vunpack.c.0.s8 %v78_v33  ;;  %v471_v29 = vsub.s32 2, %v1524_v23  ;;  %vm744_vm0 = vcmask 31768   ;;  %s1003_s7 = sshll.u32 %s1340_s6, 4  ;;  %s1004_s7 = int_to_ptr.vmem [resolvable:$true] %s1003_s7 }
  0x11   :  { %1108 = vmatprep.subr.mxu0 %v1441_v14  ;;  %vm29_vm1 = vcmask 261120   ;;  %s1306_s8 = scalar_lea.vmem %s1004_s7, 256  ;;  %p1311_p1 = scmp.lt.s32.totalorder %s1004_s7, %s1004_s7 }
  0x12   :  { %335 = vrot.lane.b32.xlu0 %v1435_v13, %s1330_s26  ;;  %1109 = vmatpush3.msra.mxu0 %v1441_v14  ;;  %vm1543_vm2 = vcmp.ne.s32.totalorder %v79_v32, 0  ;;  %vm1551_vm5 = vcmp.ne.s32.totalorder %v80_v38, 0  ;;  %v690_v32 = vsub.s32 3, %v1524_v23  ;;  %31 = vst.msk [vmem:[#allocation4 + $0x8] sm:$0xff] %vm29_vm1, %v1335_v63  ;;  %30 = vst.msk [vmem:[#allocation4] sm:$0xff] %vm29_vm1, %v1335_v63  ;;  %p1307_p0 = scmp.ne.s32.totalorder %s1004_s7, %s1306_s8  ;;  %p1312_p2 = scmp.lt.s32.totalorder %s1306_s8, %s1306_s8 }
  0x13   :  { %1110 = vmatprep.subr.mxu0 %v1414_v10  ;;  %v117_v49 = vld [vmem:[#allocation3] sm:$0xff] }
  0x14   :  { %1251 = vset.pattern.permute.xlu1 %v1332_v16  ;;  %1111 = vmatpush3.msra.mxu0 %v1414_v10  ;;  %p1313_p3 = por %p1312_p2, %p1311_p1 }
  0x15   :  { %681 = vperm.xlu1 %1251, %v36_v0   ;;  %1112 = vmatprep.subr.mxu0 %v1458_v17 }
  0x16   :  { %333 = vrot.lane.b32.xlu0 %v1451_v15, %s1330_s26  ;;  %1113 = vmatpush3.msra.mxu0 %v1458_v17  ;;  %p1314_p4 = pnand %p1313_p3, %p1307_p0 }
  0x17   :  { %1114 = vmatprep.subr.mxu0 %v1435_v13 }
  0x18   :  { %1115 = vmatpush3.msra.mxu0 %v1435_v13 }
  0x19   :  { %685 = vperm.xlu1 %1251, %v37_v4   ;;  %1116 = vmatprep.subr.mxu0 %v1451_v15 }
  0x1a   :  { %331 = vrot.lane.b32.xlu0 %v1468_v18, %s1330_s26  ;;  %1117 = vmatpush3.msra.mxu0 %v1451_v15 }
  0x1b   :  { %1118 = vmatprep.subr.mxu0 %v1468_v18 }
  0x1c   :  { %1119 = vmatpush3.msra.mxu0 %v1468_v18 }
  0x1d   :  { %355 = vrot.lane.b32.xlu1 %v1375_v3, %s1330_s26  ;;  %1120 = vmatprep.subr.mxu0 %v1479_v19 }
  0x1e   :  { %329 = vrot.lane.b32.xlu0 %v1479_v19, %s1330_s26  ;;  %1121 = vmatpush3.msra.mxu0 %v1479_v19 }
  0x1f   :  { %1122 = vmatprep.subr.mxu0 %v1491_v20  ;;  %1252 = vset.pattern.permute.xlu1 %v1328_v1 }
  0x20   :  { %1123 = vmatpush3.msra.mxu0 %v1491_v20 }
  0x21   :  { %353 = vrot.lane.b32.xlu1 %v1384_v5, %s1330_s26  ;;  %1124 = vmatprep.subr.mxu0 %v1520_v21 }
  0x22   :  { %1125 = vmatpush3.msra.mxu0 %v1520_v21 }
  0x25   :  { %351 = vrot.lane.b32.xlu1 %v1391_v6, %s1330_s26 }
  0x29   :  { %347 = vrot.lane.b32.xlu1 %v1407_v8, %s1330_s26 }
  0x2d   :  { %345 = vrot.lane.b32.xlu1 %v1420_v11, %s1330_s26 }
  0x31   :  { %343 = vrot.lane.b32.xlu1 %v1427_v12, %s1330_s26 }
  0x35   :  { %341 = vrot.lane.b32.xlu1 %v1441_v14, %s1330_s26 }
  0x39   :  { %337 = vrot.lane.b32.xlu1 %v1458_v17, %s1330_s26 }
  0x3d   :  { %574 = vrot.lane.b32.xlu1 %v1375_v3, %s1333_s23 }
  0x41   :  { %572 = vrot.lane.b32.xlu1 %v1384_v5, %s1333_s23 }
  0x45   :  { %570 = vrot.lane.b32.xlu1 %v1391_v6, %s1333_s23 }
  0x7d   :  { %v58_v34 = vpop.permute.xlu0 %57  ;;  %v228_v36 = vpop.permute.xlu1 %227 }
  0x7e   :  { %v69_v35 = vadd.f32 %v68_v30, %v58_v34  ;;  %v238_v37 = vadd.f32 %v237_v31, %v228_v36  ;;  %v691_v36 = vrot.slane %v1536_v27, %v690_v32 }
  0x80   :  { %v73_v40 = vmul.f32 0.2, %v69_v35  ;;  %vm71_vm3 = vcmp.gt.f32.partialorder %v69_v35, 0.0  ;;  %vm240_vm4 = vcmp.gt.f32.partialorder %v238_v37, 0.0  ;;  %v242_v42 = vmul.f32 0.2, %v238_v37 }
  0x81   :  { %v63_v41 = vpop.permute.xlu0 %62 }
  0x82   :  { %v70_v43 = vadd.f32 %v68_v30, %v63_v41  ;;  %v75_v44 = vsel %vm71_vm3, %v69_v35, %v73_v40  ;;  %v232_v45 = vpop.permute.xlu1 %231  ;;  %v244_v48 = vsel %vm240_vm4, %v238_v37, %v242_v42  ;;  %vm458_vm3 = vcmask 130112  }
  0x83   :  { %v1549_v46 = vsel %vm1543_vm2, %v75_v44, -1e+30  ;;  %v239_v47 = vadd.f32 %v237_v31, %v232_v45  ;;  %v1558_v51 = vsel %vm1543_vm2, %v244_v48, -1e+30  ;;  %v472_v31 = vrot.slane %v1536_v27, %v471_v29 }
  0x84   :  { %v74_v50 = vmul.f32 0.2, %v70_v43  ;;  %87 = vmax.xlane.f32.xlu0 %v1549_v46  ;;  %vm72_vm6 = vcmp.gt.f32.partialorder %v70_v43, 0.0  ;;  %vm677_vm4 = vcmask 195712  }
  0x85   :  { %vm241_vm7 = vcmp.gt.f32.partialorder %v239_v47, 0.0  ;;  %v243_v52 = vmul.f32 0.2, %v239_v47  ;;  %v350_v22 = vpop.permute.xlu0 %349 }
  0x86   :  { %v76_v53 = vsel %vm72_vm6, %v70_v43, %v74_v50 }
  0x87   :  { %v1564_v55 = vsel %vm1551_vm5, %v76_v53, -1e+30  ;;  %v245_v56 = vsel %vm241_vm7, %v239_v47, %v243_v52  ;;  %v463_v57 = vpop.permute.xlu1 %462 }
  0x88   :  { %89 = vmax.xlane.f32.xlu1 %v1564_v55  ;;  %250 = vmax.xlane.f32.xlu0 %v1558_v51  ;;  %v1570_v58 = vsel %vm1551_vm5, %v245_v56, -1e+30  ;;  %v473_v35 = vadd.f32 %v472_v31, %v463_v57 }
  0x89   :  { %v340_v25 = vpop.permute.xlu0 %339 }
  0x8a   :  { %v477_v42 = vmul.f32 0.2, %v473_v35  ;;  %vm475_vm9 = vcmp.gt.f32.partialorder %v473_v35, 0.0 }
  0x8b   :  { %v467_v59 = vpop.permute.xlu1 %466 }
  0x8c   :  { %252 = vmax.xlane.f32.xlu0 %v1570_v58  ;;  %v474_v40 = vadd.f32 %v472_v31, %v467_v59  ;;  %v479_v44 = vsel %vm475_vm9, %v473_v35, %v477_v42 }
  0x8d   :  { %v336_v28 = vpop.permute.xlu0 %335  ;;  %v1590_v48 = vsel %vm1543_vm2, %v479_v44, -1e+30 }
  0x8e   :  { %v478_v45 = vmul.f32 0.2, %v474_v40  ;;  %vm476_vm10 = vcmp.gt.f32.partialorder %v474_v40, 0.0 }
  0x90   :  { %v682_v60 = vpop.permute.xlu1 %681  ;;  %v480_v50 = vsel %vm476_vm10, %v474_v40, %v478_v45 }
  0x91   :  { %v334_v33 = vpop.permute.xlu0 %333  ;;  %v692_v43 = vadd.f32 %v691_v36, %v682_v60  ;;  %v1595_v54 = vsel %vm1551_vm5, %v480_v50, -1e+30 }
  0x93   :  { %v696_v53 = vmul.f32 0.2, %v692_v43  ;;  %vm694_vm12 = vcmp.gt.f32.partialorder %v692_v43, 0.0 }
  0x94   :  { %v686_v61 = vpop.permute.xlu1 %685 }
  0x95   :  { %v332_v38 = vpop.permute.xlu0 %331  ;;  %v693_v41 = vadd.f32 %v691_v36, %v686_v61  ;;  %v698_v57 = vsel %vm694_vm12, %v692_v43, %v696_v53  ;;  %v1616_v61 = vld [vmem:[#allocation2] sm:$0xff] }
  0x96   :  { %v1605_v59 = vsel %vm1543_vm2, %v698_v57, -1e+30 }
  0x97   :  { %v697_v27 = vmul.f32 0.2, %v693_v41  ;;  %vm695_vm11 = vcmp.gt.f32.partialorder %v693_v41, 0.0 }
  0x98   :  { %v356_v62 = vpop.permute.xlu1 %355 }
  0x99   :  { %568 = vrot.lane.b32.xlu1 %v1397_v7, %s1333_s23  ;;  %1129 = vmatprep.subr.mxu1 %v356_v62  ;;  %v330_v47 = vpop.permute.xlu0 %329  ;;  %v699_v52 = vsel %vm695_vm11, %v693_v41, %v697_v27 }
  0x9a   :  { %1130 = vmatpush3.msra.mxu1 %v356_v62  ;;  %v1599_v56 = vsel %vm1551_vm5, %v699_v52, -1e+30 }
  0x9c   :  { %v354_v0 = vpop.permute.xlu1 %353 }
  0x9d   :  { %1131 = vmatprep.subr.mxu1 %v354_v0 }
  0x9e   :  { %1132 = vmatpush3.msra.mxu1 %v354_v0 }
  0xa0   :  { %v352_v4 = vpop.permute.xlu1 %351 }
  0xa1   :  { %1133 = vmatprep.subr.mxu1 %v352_v4 }
  0xa2   :  { %327 = vrot.lane.b32.xlu0 %v1491_v20, %s1330_s26  ;;  %1134 = vmatpush3.msra.mxu1 %v352_v4 }
  0xa3   :  { %1135 = vmatprep.subr.mxu1 %v350_v22 }
  0xa4   :  { %v348_v24 = vpop.permute.xlu1 %347  ;;  %1136 = vmatpush3.msra.mxu1 %v350_v22  ;;  %v1623_v22 = vld [vmem:[#allocation2 + $0x8] sm:$0xff] }
  0xa5   :  { %1137 = vmatprep.subr.mxu1 %v348_v24 }
  0xa6   :  { %1138 = vmatpush3.msra.mxu1 %v348_v24 }
  0xa8   :  { %v346_v26 = vpop.permute.xlu1 %345 }
  0xa9   :  { %1139 = vmatprep.subr.mxu1 %v346_v26 }
  0xaa   :  { %1140 = vmatpush3.msra.mxu1 %v346_v26 }
  0xac   :  { %v344_v30 = vpop.permute.xlu1 %343 }
  0xad   :  { %1141 = vmatprep.subr.mxu1 %v344_v30 }
  0xae   :  { %1142 = vmatpush3.msra.mxu1 %v344_v30 }
  0xb0   :  { %v342_v34 = vpop.permute.xlu1 %341 }
  0xb1   :  { %1143 = vmatprep.subr.mxu1 %v342_v34 }
  0xb2   :  { %1144 = vmatpush3.msra.mxu1 %v342_v34 }
  0xb3   :  { %1145 = vmatprep.subr.mxu1 %v340_v25 }
  0xb4   :  { %v338_v37 = vpop.permute.xlu1 %337  ;;  %1146 = vmatpush3.msra.mxu1 %v340_v25 }
  0xb5   :  { %1147 = vmatprep.subr.mxu1 %v338_v37 }
  0xb6   :  { %1148 = vmatpush3.msra.mxu1 %v338_v37 }
  0xb7   :  { %1149 = vmatprep.subr.mxu1 %v336_v28 }
  0xb8   :  { %v1585_v23 = vpop.permute.xlu1 %574  ;;  %1150 = vmatpush3.msra.mxu1 %v336_v28 }
  0xb9   :  { %1164 = vmatprep.subr.mxu0 %v1585_v23  ;;  %1151 = vmatprep.subr.mxu1 %v334_v33 }
  0xba   :  { %1152 = vmatpush3.msra.mxu1 %v334_v33 }
  0xbb   :  { %1153 = vmatprep.subr.mxu1 %v332_v38 }
  0xbc   :  { %1154 = vmatpush3.msra.mxu1 %v332_v38  ;;  %v1614_v60 = vpop.permute.xlu1 %572 }
  0xbd   :  { %485 = vmax.xlane.f32.xlu1 %v1590_v48  ;;  %1155 = vmatprep.subr.mxu1 %v330_v47 }
  0xbe   :  { %1156 = vmatpush3.msra.mxu1 %v330_v47 }
  0xc0   :  { %v1618_v62 = vpop.permute.xlu1 %570 }
  0xc1   :  { %487 = vmax.xlane.f32.xlu1 %v1595_v54  ;;  %706 = vmax.xlane.f32.xlu0 %v1599_v56 }
  0xc5   :  { %704 = vmax.xlane.f32.xlu1 %v1605_v59 }
  0xd6   :  { %564 = vrot.lane.b32.xlu1 %v1420_v11, %s1333_s23 }
  0xda   :  { %793 = vrot.lane.b32.xlu1 %v1375_v3, %s1336_s1 }
  0xde   :  { %791 = vrot.lane.b32.xlu1 %v1384_v5, %s1336_s1 }
 0x10d   :  { %v88_v0 = vpop.xlane.xlu0 %87 }
 0x10e   :  { %v1621_v4 = vmax.f32 %v1616_v61, %v88_v0 }
 0x110   :  { %v93_v24 = vsub.f32 %v1616_v61, %v1621_v4  ;;  %130 = vst.msk [vmem:[#allocation2] sm:$0xff] %vm127_vm13, %v1621_v4  ;;  %101 = vperm.xlu0 %1248, %v1621_v4  }
 0x111   :  { %v90_v3 = vpop.xlane.xlu1 %89  ;;  %v251_v5 = vpop.xlane.xlu0 %250 }
 0x112   :  { %v1631_v25 = vmax.f32 %v1623_v22, %v90_v3 }
 0x114   :  { %v94_v26 = vsub.f32 %v1623_v22, %v1631_v25  ;;  %131 = vst.msk [vmem:[#allocation2 + $0x8] sm:$0xff] %vm127_vm13, %v1631_v25  ;;  %106 = vperm.xlu1 %1252, %v1631_v25   ;;  %566 = vrot.lane.b32.xlu0 %v1407_v8, %s1333_s23 }
 0x115   :  { %v253_v28 = vpop.xlane.xlu0 %252 }
 0x117   :  { %v1640_v29 = vld [vmem:[#allocation2] sm:$0xff] }
 0x118   :  { %v1643_v30 = vmax.f32 %v1640_v29, %v251_v5  ;;  %789 = vrot.lane.b32.xlu1 %v1391_v6, %s1336_s1  ;;  %325 = vrot.lane.b32.xlu0 %v1520_v21, %s1330_s26  ;;  %s1338_s26 = smov 16  }
 0x119   :  { %1253 = vset.pattern.permute.xlu1 %v1329_v2  ;;  %v328_v31 = vpop.permute.xlu0 %327 }
 0x11a   :  { %v256_v32 = vsub.f32 %v1640_v29, %v1643_v30  ;;  %293 = vst.msk [vmem:[#allocation2] sm:$0xff] %vm290_vm14, %v1643_v30  ;;  %1157 = vmatprep.subr.mxu1 %v328_v31 }
 0x11b   :  { %v1654_v33 = vld [vmem:[#allocation2 + $0x8] sm:$0xff]  ;;  %1158 = vmatpush3.msra.mxu1 %v328_v31 }
 0x11c   :  { %v1657_v34 = vmax.f32 %v1654_v33, %v253_v28  ;;  %264 = vperm.xlu1 %1253, %v1643_v30   ;;  %562 = vrot.lane.b32.xlu0 %v1427_v12, %s1333_s23 }
 0x11e   :  { %v257_v6 = vsub.f32 %v1654_v33, %v1657_v34  ;;  %294 = vst.msk [vmem:[#allocation2 + $0x8] sm:$0xff] %vm290_vm14, %v1657_v34 }
 0x120   :  { %269 = vperm.xlu1 %1253, %v1657_v34   ;;  %560 = vrot.lane.b32.xlu0 %v1441_v14, %s1333_s23 }
 0x124   :  { %558 = vrot.lane.b32.xlu0 %v1414_v10, %s1333_s23  ;;  %787 = vrot.lane.b32.xlu1 %v1397_v7, %s1336_s1  ;;  %v1690_v7 = vpop.permute.xlu1 %568 }
 0x125   :  { %1254 = vset.pattern.permute.xlu1 %v1331_v9  ;;  %v1706_v38 = vld [vmem:[#allocation2 + $0x8] sm:$0xff] }
 0x128   :  { %556 = vrot.lane.b32.xlu0 %v1458_v17, %s1333_s23  ;;  %783 = vrot.lane.b32.xlu1 %v1420_v11, %s1336_s1 }
 0x12c   :  { %554 = vrot.lane.b32.xlu0 %v1435_v13, %s1333_s23 }
 0x130   :  { %785 = vrot.lane.b32.xlu0 %v1407_v8, %s1336_s1  ;;  %v1694_v8 = vld [vmem:[#allocation2] sm:$0xff] }
 0x134   :  { %552 = vrot.lane.b32.xlu0 %v1451_v15, %s1333_s23 }
 0x138   :  { %550 = vrot.lane.b32.xlu0 %v1468_v18, %s1333_s23 }
 0x13c   :  { %548 = vrot.lane.b32.xlu0 %v1479_v19, %s1333_s23 }
 0x140   :  { %546 = vrot.lane.b32.xlu0 %v1491_v20, %s1333_s23 }
 0x144   :  { %544 = vrot.lane.b32.xlu0 %v1520_v21, %s1333_s23 }
 0x146   :  { %v486_v11 = vpop.xlane.xlu1 %485 }
 0x147   :  { %v1697_v35 = vmax.f32 %v1694_v8, %v486_v11 }
 0x148   :  { %773 = vrot.lane.b32.xlu0 %v1435_v13, %s1336_s1 }
 0x149   :  { %v491_v36 = vsub.f32 %v1694_v8, %v1697_v35  ;;  %528 = vst.msk [vmem:[#allocation2] sm:$0xff] %vm525_vm15, %v1697_v35  ;;  %499 = vperm.xlu1 %1254, %v1697_v35  }
 0x14a   :  { %v488_v37 = vpop.xlane.xlu1 %487  ;;  %v707_v44 = vpop.xlane.xlu0 %706 }
 0x14b   :  { %v1709_v40 = vmax.f32 %v1706_v38, %v488_v37 }
 0x14c   :  { %769 = vrot.lane.b32.xlu0 %v1468_v18, %s1336_s1 }
 0x14d   :  { %v492_v13 = vsub.f32 %v1706_v38, %v1709_v40  ;;  %529 = vst.msk [vmem:[#allocation2 + $0x8] sm:$0xff] %vm525_vm15, %v1709_v40  ;;  %504 = vperm.xlu1 %1254, %v1709_v40  }
 0x14e   :  { %v705_v41 = vpop.xlane.xlu1 %704 }
 0x14f   :  { %v495_v29 = vmul.f32 1.442695, %v492_v13 }
 0x150   :  { %v1718_v42 = vld [vmem:[#allocation2] sm:$0xff]  ;;  %765 = vrot.lane.b32.xlu0 %v1491_v20, %s1336_s1 }
 0x151   :  { %v1723_v43 = vmax.f32 %v1718_v42, %v705_v41  ;;  %781 = vrot.lane.b32.xlu1 %v1427_v12, %s1336_s1 }
 0x152   :  { %1255 = vset.pattern.permute.xlu1 %v1332_v16  ;;  %v565_v12 = vpop.permute.xlu1 %564 }
 0x153   :  { %v710_v18 = vsub.f32 %v1718_v42, %v1723_v43  ;;  %747 = vst.msk [vmem:[#allocation2] sm:$0xff] %vm744_vm0, %v1723_v43 }
 0x154   :  { %v1732_v45 = vld [vmem:[#allocation2 + $0x8] sm:$0xff] }
 0x155   :  { %v1735_v27 = vmax.f32 %v1732_v45, %v707_v44  ;;  %718 = vperm.xlu1 %1255, %v1723_v43  }
 0x156   :  { %v794_v47 = vpop.permute.xlu1 %793 }
 0x157   :  { %v711_v20 = vsub.f32 %v1732_v45, %v1735_v27  ;;  %748 = vst.msk [vmem:[#allocation2 + $0x8] sm:$0xff] %vm744_vm0, %v1735_v27 }
 0x159   :  { %723 = vperm.xlu1 %1255, %v1735_v27  }
 0x15d   :  { %779 = vrot.lane.b32.xlu1 %v1441_v14, %s1336_s1  ;;  %v1756_v14 = vpop.permute.xlu1 %791 }
 0x15e   :  { %1256 = vset.pattern.permute.xlu1 %v1328_v1 }
 0x161   :  { %777 = vrot.lane.b32.xlu1 %v1414_v10, %s1336_s1 }
 0x165   :  { %775 = vrot.lane.b32.xlu1 %v1458_v17, %s1336_s1 }
 0x169   :  { %771 = vrot.lane.b32.xlu1 %v1451_v15, %s1336_s1 }
 0x16d   :  { %767 = vrot.lane.b32.xlu1 %v1479_v19, %s1336_s1 }
 0x171   :  { %763 = vrot.lane.b32.xlu1 %v1520_v21, %s1336_s1 }
 0x18b   :  { %v102_v50 = vpop.permute.xlu0 %101 }
 0x18c   :  { %v109_v52 = vsub.f32 %v1549_v46, %v102_v50 }
 0x18e   :  { %v111_v10 = vmul.f32 1.442695, %v109_v52  ;;  %v95_v52 = vmul.f32 1.442695, %v93_v24 }
 0x18f   :  { %v107_v53 = vpop.permute.xlu1 %106  ;;  %v567_v57 = vpop.permute.xlu0 %566 }
 0x190   :  { %1270 = vpow2.f32 %v111_v10  ;;  %v110_v17 = vsub.f32 %v1564_v55, %v107_v53 }
 0x192   :  { %v113_v15 = vmul.f32 1.442695, %v110_v17 }
 0x193   :  { %v790_v0 = vpop.permute.xlu1 %789  ;;  %v326_v3 = vpop.permute.xlu0 %325 }
 0x194   :  { %1272 = vpow2.f32 %v113_v15  ;;  %1159 = vmatprep.subr.mxu1 %v326_v3 }
 0x195   :  { %1160 = vmatpush3.msra.mxu1 %v326_v3 }
 0x196   :  { %1199 = vmatprep.subr.mxu1 %v794_v47 }
 0x197   :  { %v265_v19 = vpop.permute.xlu1 %264  ;;  %v563_v21 = vpop.permute.xlu0 %562 }
 0x198   :  { %v272_v5 = vsub.f32 %v1558_v51, %v265_v19  ;;  %v97_v51 = vmul.f32 1.442695, %v94_v26 }
 0x19a   :  { %v274_v28 = vmul.f32 1.442695, %v272_v5 }
 0x19b   :  { %v270_v31 = vpop.permute.xlu1 %269  ;;  %v561_v46 = vpop.permute.xlu0 %560 }
 0x19c   :  { %1274 = vpow2.f32 %v274_v28  ;;  %v273_v11 = vsub.f32 %v1570_v58, %v270_v31 }
 0x19d   :  { %v1271_v37 = vpop.eup %1270 }
 0x19e   :  { %v276_v41 = vmul.f32 1.442695, %v273_v11  ;;  %1126 = vmatprep.mubr.msk.f32.mxu0 %vm1543_vm2, %v1271_v37  ;;  %v115_v55 = vsel %vm1543_vm2, %v1271_v37, 0.0 }
 0x19f   :  { %121 = vadd.xlane.f32.xlu0 %v115_v55  ;;  %v559_v44 = vpop.permute.xlu0 %558  ;;  %v788_v61 = vpop.permute.xlu1 %787 }
 0x1a0   :  { %1276 = vpow2.f32 %v276_v41 }
 0x1a1   :  { %v1273_v50 = vpop.eup %1272  ;;  %1278 = vpow2.f32 %v97_v51 }
 0x1a2   :  { %1127 = vmatmul.mubr.msk.f32.vlgmr.msra.gmra.mxu0 %vm1551_vm5, %v1273_v50  ;;  %v116_v58 = vsel %vm1551_vm5, %v1273_v50, 0.0  ;;  %1280 = vpow2.f32 %v95_v52 }
 0x1a3   :  { %1165 = vmatpush3.msra.mxu0 %v1585_v23  ;;  %123 = vadd.xlane.f32.xlu1 %v116_v58  ;;  %v557_v10 = vpop.permute.xlu0 %556  ;;  %v784_v26 = vpop.permute.xlu1 %783  ;;  %v260_v58 = vmul.f32 1.442695, %v257_v6  ;;  %v714_v6 = vmul.f32 1.442695, %v711_v20  ;;  %v118_v20 = vld [vmem:[#allocation3 + $0x8] sm:$0xff] }
 0x1a4   :  { %1166 = vmatprep.subr.mxu0 %v1614_v60 }
 0x1a5   :  { %1167 = vmatpush3.msra.mxu0 %v1614_v60 }
 0x1a6   :  { %1168 = vmatprep.subr.mxu0 %v1618_v62 }
 0x1a7   :  { %1169 = vmatpush3.msra.mxu0 %v1618_v62  ;;  %v555_v22 = vpop.permute.xlu0 %554 }
 0x1a8   :  { %1170 = vmatprep.subr.mxu0 %v1690_v7 }
 0x1a9   :  { %v1782_v25 = vpop.eup %1274  ;;  %1171 = vmatpush3.msra.mxu0 %v1690_v7 }
 0x1aa   :  { %1172 = vmatprep.subr.mxu0 %v567_v57  ;;  %1161 = vmatprep.mubr.msk.f32.mxu1 %vm1543_vm2, %v1782_v25  ;;  %v278_v28 = vsel %vm1543_vm2, %v1782_v25, 0.0  ;;  %v493_v25 = vmul.f32 1.442695, %v491_v36 }
 0x1ab   :  { %1173 = vmatpush3.msra.mxu0 %v567_v57  ;;  %v786_v23 = vpop.permute.xlu0 %785 }
 0x1ac   :  { %1174 = vmatprep.subr.mxu0 %v565_v12 }
 0x1ad   :  { %v1790_v60 = vpop.eup %1276  ;;  %1175 = vmatpush3.msra.mxu0 %v565_v12 }
 0x1ae   :  { %1162 = vmatmul.mubr.msk.f32.vlgmr.msra.gmra.mxu1 %vm1551_vm5, %v1790_v60  ;;  %1176 = vmatprep.subr.mxu0 %v563_v21  ;;  %v1797_v63 = vpop.eup %1278  ;;  %v279_v11 = vsel %vm1551_vm5, %v1790_v60, 0.0 }
 0x1af   :  { %1200 = vmatpush3.msra.mxu1 %v794_v47  ;;  %1177 = vmatpush3.msra.mxu0 %v563_v21  ;;  %v553_v62 = vpop.permute.xlu0 %552  ;;  %v1799_v24 = vpop.eup %1280  ;;  %v120_v60 = vmul.f32 %v1797_v63, %v118_v20 }
 0x1b0   :  { %1201 = vmatprep.subr.mxu1 %v1756_v14  ;;  %1178 = vmatprep.subr.mxu0 %v561_v46  ;;  %v119_v45 = vmul.f32 %v1799_v24, %v117_v49 }
 0x1b1   :  { %1202 = vmatpush3.msra.mxu1 %v1756_v14  ;;  %1179 = vmatpush3.msra.mxu0 %v561_v46 }
 0x1b2   :  { %1203 = vmatprep.subr.mxu1 %v790_v0  ;;  %1180 = vmatprep.subr.mxu0 %v559_v44 }
 0x1b3   :  { %1204 = vmatpush3.msra.mxu1 %v790_v0  ;;  %1181 = vmatpush3.msra.mxu0 %v559_v44  ;;  %v551_v4 = vpop.permute.xlu0 %550 }
 0x1b4   :  { %1205 = vmatprep.subr.mxu1 %v788_v61  ;;  %141 = vperm.xlu1 %1256, %v1797_v63   ;;  %v712_v63 = vmul.f32 1.442695, %v710_v18 }
 0x1b5   :  { %1206 = vmatpush3.msra.mxu1 %v788_v61  ;;  %136 = vperm.xlu0 %1248, %v1799_v24   ;;  %v132_v24 = vld [vmem:[#allocation4] sm:$0xff] }
 0x1b6   :  { %1207 = vmatprep.subr.mxu1 %v786_v23  ;;  %1182 = vmatprep.subr.mxu0 %v557_v10 }
 0x1b7   :  { %1208 = vmatpush3.msra.mxu1 %v786_v23  ;;  %1183 = vmatpush3.msra.mxu0 %v557_v10  ;;  %v549_v7 = vpop.permute.xlu0 %548 }
 0x1b8   :  { %1209 = vmatprep.subr.mxu1 %v784_v26  ;;  %1184 = vmatprep.subr.mxu0 %v555_v22 }
 0x1b9   :  { %1210 = vmatpush3.msra.mxu1 %v784_v26  ;;  %1185 = vmatpush3.msra.mxu0 %v555_v22 }
 0x1ba   :  { %1186 = vmatprep.subr.mxu0 %v553_v62  ;;  %1257 = vset.pattern.permute.xlu0 %v1329_v2 }
 0x1bb   :  { %1187 = vmatpush3.msra.mxu0 %v553_v62  ;;  %v547_v12 = vpop.permute.xlu0 %546  ;;  %1258 = vset.pattern.permute.xlu1 %v1329_v2 }
 0x1bc   :  { %1188 = vmatprep.subr.mxu0 %v551_v4 }
 0x1bd   :  { %1189 = vmatpush3.msra.mxu0 %v551_v4 }
 0x1be   :  { %1190 = vmatprep.subr.mxu0 %v549_v7 }
 0x1bf   :  { %1191 = vmatpush3.msra.mxu0 %v549_v7  ;;  %v545_v47 = vpop.permute.xlu0 %544 }
 0x1c0   :  { %1192 = vmatprep.subr.mxu0 %v547_v12 }
 0x1c1   :  { %1193 = vmatpush3.msra.mxu0 %v547_v12 }
 0x1c2   :  { %1194 = vmatprep.subr.mxu0 %v545_v47 }
 0x1c3   :  { %1195 = vmatpush3.msra.mxu0 %v545_v47  ;;  %v774_v44 = vpop.permute.xlu0 %773 }
 0x1c4   :  { %v500_v14 = vpop.permute.xlu1 %499 }
 0x1c5   :  { %v507_v53 = vsub.f32 %v1590_v48, %v500_v14 }
 0x1c7   :  { %v509_v57 = vmul.f32 1.442695, %v507_v53  ;;  %v770_v51 = vpop.permute.xlu0 %769  ;;  %v133_v53 = vld [vmem:[#allocation4 + $0x8] sm:$0xff] }
 0x1c8   :  { %v505_v17 = vpop.permute.xlu1 %504 }
 0x1c9   :  { %1282 = vpow2.f32 %v509_v57  ;;  %v508_v15 = vsub.f32 %v1595_v54, %v505_v17 }
 0x1cb   :  { %v511_v0 = vmul.f32 1.442695, %v508_v15  ;;  %v766_v22 = vpop.permute.xlu0 %765 }
 0x1cc   :  { %v782_v3 = vpop.permute.xlu1 %781 }
 0x1cd   :  { %1284 = vpow2.f32 %v511_v0  ;;  %1211 = vmatprep.subr.mxu1 %v782_v3 }
 0x1ce   :  { %1212 = vmatpush3.msra.mxu1 %v782_v3 }
 0x1d0   :  { %v719_v19 = vpop.permute.xlu1 %718 }
 0x1d1   :  { %v726_v21 = vsub.f32 %v1605_v59, %v719_v19  ;;  %v258_v59 = vmul.f32 1.442695, %v256_v32 }
 0x1d3   :  { %v728_v5 = vmul.f32 1.442695, %v726_v21 }
 0x1d4   :  { %v724_v31 = vpop.permute.xlu1 %723  ;;  %284 = vadd.xlane.f32.xlu0 %v278_v28 }
 0x1d5   :  { %1286 = vpow2.f32 %v728_v5  ;;  %v727_v48 = vsub.f32 %v1599_v56, %v724_v31 }
 0x1d6   :  { %v1283_v46 = vpop.eup %1282 }
 0x1d7   :  { %v730_v54 = vmul.f32 1.442695, %v727_v48  ;;  %1196 = vmatprep.mubr.msk.f32.mxu0 %vm1543_vm2, %v1283_v46  ;;  %v513_v56 = vsel %vm1543_vm2, %v1283_v46, 0.0 }
 0x1d8   :  { %286 = vadd.xlane.f32.xlu1 %v279_v11  ;;  %v780_v37 = vpop.permute.xlu1 %779 }
 0x1d9   :  { %1288 = vpow2.f32 %v730_v54  ;;  %1213 = vmatprep.subr.mxu1 %v780_v37 }
 0x1da   :  { %v1285_v41 = vpop.eup %1284  ;;  %1214 = vmatpush3.msra.mxu1 %v780_v37  ;;  %1290 = vpow2.f32 %v258_v59 }
 0x1db   :  { %1197 = vmatmul.mubr.msk.f32.vlgmr.msra.gmra.mxu0 %vm1551_vm5, %v1285_v41  ;;  %v514_v30 = vsel %vm1551_vm5, %v1285_v41, 0.0  ;;  %1292 = vpow2.f32 %v495_v29 }
 0x1dc   :  { %519 = vadd.xlane.f32.xlu1 %v513_v56  ;;  %v778_v55 = vpop.permute.xlu1 %777  ;;  %1294 = vpow2.f32 %v260_v58 }
 0x1dd   :  { %1215 = vmatprep.subr.mxu1 %v778_v55  ;;  %1296 = vpow2.f32 %v493_v25 }
 0x1de   :  { %1216 = vmatpush3.msra.mxu1 %v778_v55  ;;  %1298 = vpow2.f32 %v714_v6 }
 0x1df   :  { %1300 = vpow2.f32 %v712_v63 }
 0x1e0   :  { %521 = vadd.xlane.f32.xlu1 %v514_v30  ;;  %v776_v32 = vpop.permute.xlu1 %775 }
 0x1e1   :  { %1217 = vmatprep.subr.mxu1 %v776_v32 }
 0x1e2   :  { %v1287_v50 = vpop.eup %1286  ;;  %1218 = vmatpush3.msra.mxu1 %v776_v32 }
 0x1e3   :  { %1219 = vmatprep.subr.mxu1 %v774_v44  ;;  %1231 = vmatprep.mubr.msk.f32.mxu1 %vm1543_vm2, %v1287_v50  ;;  %v732_v38 = vsel %vm1543_vm2, %v1287_v50, 0.0  ;;  %vm223_vm2 = vcmask 64512  }
 0x1e4   :  { %738 = vadd.xlane.f32.xlu1 %v732_v38  ;;  %1220 = vmatpush3.msra.mxu1 %v774_v44  ;;  %v772_v40 = vpop.permute.xlu1 %771 }
 0x1e5   :  { %1221 = vmatprep.subr.mxu1 %v772_v40 }
 0x1e6   :  { %v1289_v13 = vpop.eup %1288  ;;  %1222 = vmatpush3.msra.mxu1 %v772_v40 }
 0x1e7   :  { %1223 = vmatprep.subr.mxu1 %v770_v51  ;;  %v733_v52 = vsel %vm1551_vm5, %v1289_v13, 0.0  ;;  %v1291_v39 = vpop.eup %1290 }
 0x1e8   :  { %740 = vadd.xlane.f32.xlu1 %v733_v52  ;;  %1224 = vmatpush3.msra.mxu1 %v770_v51  ;;  %v768_v10 = vpop.permute.xlu1 %767  ;;  %v1293_v34 = vpop.eup %1292 }
 0x1e9   :  { %1225 = vmatprep.subr.mxu1 %v768_v10  ;;  %v1295_v8 = vpop.eup %1294 }
 0x1ea   :  { %1226 = vmatpush3.msra.mxu1 %v768_v10  ;;  %299 = vperm.xlu0 %1257, %v1291_v39   ;;  %v1297_v35 = vpop.eup %1296 }
 0x1eb   :  { %1227 = vmatprep.subr.mxu1 %v766_v22  ;;  %v1849_v36 = vpop.eup %1298 }
 0x1ec   :  { %1228 = vmatpush3.msra.mxu1 %v766_v22  ;;  %v764_v33 = vpop.permute.xlu1 %763  ;;  %v1301_v56 = vpop.eup %1300 }
 0x1ed   :  { %1229 = vmatprep.subr.mxu1 %v764_v33 }
 0x1ee   :  { %1230 = vmatpush3.msra.mxu1 %v764_v33  ;;  %1260 = vset.pattern.permute.xlu0 %v1331_v9 }
 0x1ef   :  { %1232 = vmatmul.mubr.msk.f32.vlgmr.msra.gmra.mxu1 %vm1551_vm5, %v1289_v13  ;;  %539 = vperm.xlu0 %1260, %v1293_v34   ;;  %vm896_vm5 = vcmask 261312  }
 0x1f3   :  { %1261 = vset.pattern.permute.xlu0 %v1332_v16 }
 0x1f9   :  { %304 = vperm.xlu1 %1258, %v1295_v8  }
 0x1fd   :  { %1259 = vset.pattern.permute.xlu1 %v1331_v9 }
 0x1fe   :  { %534 = vperm.xlu1 %1259, %v1297_v35  }
 0x202   :  { %1262 = vset.pattern.permute.xlu1 %v1332_v16 }
 0x203   :  { %758 = vperm.xlu1 %1262, %v1849_v36  }
 0x207   :  { %1263 = vset.pattern.permute.xlu1 %v1328_v1 }
 0x228   :  { %v122_v27 = vpop.xlane.xlu0 %121 }
 0x229   :  { %v125_v23 = vadd.f32 %v122_v27, %v119_v45 }
 0x22b   :  { %128 = vst.msk [vmem:[#allocation3] sm:$0xff] %vm127_vm13, %v125_v23 }
 0x22c   :  { %v124_v61 = vpop.xlane.xlu1 %123 }
 0x22d   :  { %v126_v62 = vadd.f32 %v124_v61, %v120_v60 }
 0x22f   :  { %129 = vst.msk [vmem:[#allocation3 + $0x8] sm:$0xff] %vm127_vm13, %v126_v62 }
 0x230   :  { %v137_v4 = vpop.permute.xlu0 %136  ;;  %v142_v12 = vpop.permute.xlu1 %141 }
 0x231   :  { %v145_v15 = vmul.f32 %v142_v12, %v133_v53  ;;  %v144_v21 = vmul.f32 %v137_v4, %v132_v24 }
 0x232   :  { %v280_v26 = vld [vmem:[#allocation3] sm:$0xff] }
 0x233   :  { %v282_v7 = vmul.f32 %v1291_v39, %v280_v26 }
 0x236   :  { %v281_v14 = vld [vmem:[#allocation3 + $0x8] sm:$0xff] }
 0x237   :  { %v283_v17 = vmul.f32 %v1295_v8, %v281_v14 }
 0x25d   :  { %v285_v47 = vpop.xlane.xlu0 %284 }
 0x25e   :  { %v288_v57 = vadd.f32 %v285_v47, %v282_v7 }
 0x260   :  { %291 = vst.msk [vmem:[#allocation3] sm:$0xff] %vm290_vm14, %v288_v57 }
 0x261   :  { %v287_v0 = vpop.xlane.xlu1 %286 }
 0x262   :  { %v289_v3 = vadd.f32 %v287_v0, %v283_v17  ;;  %v1128_v19 = vpop.f32.mrf.mxu0 }
 0x263   :  { %v222_v5 = vadd.f32 %v1128_v19, %v145_v15 }
 0x264   :  { %292 = vst.msk [vmem:[#allocation3 + $0x8] sm:$0xff] %vm290_vm14, %v289_v3  ;;  %v212_v28 = vpop.f32.mrf.mxu0 }
 0x265   :  { %225 = vst.msk [vmem:[#allocation4 + $0x8] sm:$0xff] %vm223_vm2, %v222_v5  ;;  %v221_v31 = vadd.f32 %v212_v28, %v144_v21  ;;  %v520_v48 = vpop.xlane.xlu1 %519 }
 0x267   :  { %224 = vst.msk [vmem:[#allocation4] sm:$0xff] %vm223_vm2, %v221_v31  ;;  %v515_v46 = vld [vmem:[#allocation3] sm:$0xff] }
 0x268   :  { %v517_v42 = vmul.f32 %v1297_v35, %v515_v46 }
 0x269   :  { %v522_v11 = vpop.xlane.xlu1 %521 }
 0x26a   :  { %v523_v43 = vadd.f32 %v520_v48, %v517_v42 }
 0x26b   :  { %v516_v18 = vld [vmem:[#allocation3 + $0x8] sm:$0xff] }
 0x26c   :  { %526 = vst.msk [vmem:[#allocation3] sm:$0xff] %vm525_vm15, %v523_v43  ;;  %v518_v54 = vmul.f32 %v1293_v34, %v516_v18  ;;  %v300_v34 = vpop.permute.xlu0 %299 }
 0x26d   :  { %v739_v55 = vpop.xlane.xlu1 %738 }
 0x26e   :  { %v524_v59 = vadd.f32 %v522_v11, %v518_v54  ;;  %v1163_v37 = vpop.f32.mrf.mxu1  ;;  %v295_v35 = vld [vmem:[#allocation4] sm:$0xff] }
 0x26f   :  { %452 = vrot.lane.b32.xlu0 %v1163_v37, %s1337_s3  ;;  %v307_v27 = vmul.f32 %v300_v34, %v295_v35 }
 0x270   :  { %527 = vst.msk [vmem:[#allocation3 + $0x8] sm:$0xff] %vm525_vm15, %v524_v59  ;;  %v439_v41 = vpop.f32.mrf.mxu1  ;;  %v540_v8 = vpop.permute.xlu0 %539 }
 0x271   :  { %450 = vrot.lane.b32.xlu1 %v439_v41, %s1337_s3  ;;  %v741_v51 = vpop.xlane.xlu1 %740 }
 0x273   :  { %v734_v44 = vld [vmem:[#allocation3] sm:$0xff]  ;;  %753 = vperm.xlu0 %1261, %v1301_v56  }
 0x274   :  { %v736_v29 = vmul.f32 %v1301_v56, %v734_v44 }
 0x276   :  { %v742_v30 = vadd.f32 %v739_v55, %v736_v29 }
 0x277   :  { %v735_v32 = vld [vmem:[#allocation3 + $0x8] sm:$0xff]  ;;  %1264 = vset.pattern.permute.xlu0 %v1328_v1 }
 0x278   :  { %745 = vst.msk [vmem:[#allocation3] sm:$0xff] %vm744_vm0, %v742_v30  ;;  %v737_v50 = vmul.f32 %v1849_v36, %v735_v32  ;;  %v296_v36 = vld [vmem:[#allocation4 + $0x8] sm:$0xff] }
 0x27a   :  { %v743_v38 = vadd.f32 %v741_v51, %v737_v50 }
 0x27c   :  { %746 = vst.msk [vmem:[#allocation3 + $0x8] sm:$0xff] %vm744_vm0, %v743_v38 }
 0x27f   :  { %v902_v40 = vld [vmem:[#allocation3] sm:$0xff] }
 0x280   :  { %v904_v13 = vmax.f32 %v902_v40, 1e-20 }
 0x282   :  { %1302 = vrcp.f32 %v904_v13 }
 0x283   :  { %v927_v58 = vld [vmem:[#allocation3 + $0x8] sm:$0xff] }
 0x284   :  { %v929_v52 = vmax.f32 %v927_v58, 1e-20 }
 0x286   :  { %1304 = vrcp.f32 %v929_v52 }
 0x28f   :  { %v1303_v10 = vpop.eup %1302 }
 0x290   :  { %912 = vperm.xlu1 %1263, %v1303_v10  }
 0x293   :  { %v1305_v22 = vpop.eup %1304 }
 0x294   :  { %917 = vperm.xlu0 %1264, %v1305_v22   ;;  %1265 = vset.pattern.permute.xlu1 %v1329_v2  ;;  %v305_v2 = vpop.permute.xlu1 %304 }
 0x295   :  { %v308_v49 = vmul.f32 %v305_v2, %v296_v36 }
 0x298   :  { %1266 = vset.pattern.permute.xlu0 %v1331_v9  ;;  %v535_v6 = vpop.permute.xlu1 %534 }
 0x29b   :  { %v1198_v1 = vpop.f32.mrf.mxu0 }
 0x29c   :  { %671 = vrot.lane.b32.xlu1 %v1198_v1, %s1338_s26 }
 0x29d   :  { %v658_v39 = vpop.f32.mrf.mxu0 }
 0x2a0   :  { %669 = vrot.lane.b32.xlu1 %v658_v39, %s1338_s26 }
 0x2a4   :  { %936 = vperm.xlu1 %1265, %v1303_v10  }
 0x2a8   :  { %941 = vperm.xlu1 %1265, %v1305_v22  }
 0x2ac   :  { %1267 = vset.pattern.permute.xlu1 %v1331_v9  ;;  %v759_v9 = vpop.permute.xlu1 %758 }
 0x2af   :  { %v1233_v25 = vpop.f32.mrf.mxu1 }
 0x2b0   :  { %890 = vrot.lane.b32.xlu0 %v1233_v25, %s1339_s5 }
 0x2b1   :  { %v877_v33 = vpop.f32.mrf.mxu1 }
 0x2b2   :  { %888 = vrot.lane.b32.xlu1 %v877_v33, %s1339_s5 }
 0x2b4   :  { %960 = vperm.xlu0 %1266, %v1303_v10  }
 0x2b6   :  { %965 = vperm.xlu1 %1267, %v1305_v22  }
 0x2b8   :  { %1269 = vset.pattern.permute.xlu0 %v1332_v16 }
 0x2b9   :  { %989 = vperm.xlu0 %1269, %v1305_v22  }
 0x2ba   :  { %1268 = vset.pattern.permute.xlu1 %v1332_v16 }
 0x2bb   :  { %984 = vperm.xlu1 %1268, %v1303_v10  }
 0x2e1   :  { %v453_v45 = vpop.permute.xlu0 %452 }
 0x2e2   :  { %v457_v20 = vadd.f32 %v453_v45, %v308_v49 }
 0x2e3   :  { %v451_v23 = vpop.permute.xlu1 %450 }
 0x2e4   :  { %460 = vst.msk [vmem:[#allocation4 + $0x8] sm:$0xff] %vm458_vm3, %v457_v20  ;;  %v456_v60 = vadd.f32 %v451_v23, %v307_v27 }
 0x2e6   :  { %459 = vst.msk [vmem:[#allocation4] sm:$0xff] %vm458_vm3, %v456_v60 }
 0x2eb   :  { %v531_v61 = vld [vmem:[#allocation4 + $0x8] sm:$0xff] }
 0x2ec   :  { %v543_v62 = vmul.f32 %v540_v8, %v531_v61 }
 0x2ed   :  { %v530_v26 = vld [vmem:[#allocation4] sm:$0xff] }
 0x2ee   :  { %v542_v12 = vmul.f32 %v535_v6, %v530_v26  ;;  %v754_v53 = vpop.permute.xlu0 %753 }
 0x30b   :  { %v913_v16 = vpop.permute.xlu1 %912 }
 0x30f   :  { %v672_v4 = vpop.permute.xlu1 %671  ;;  %v918_v57 = vpop.permute.xlu0 %917 }
 0x310   :  { %v676_v7 = vadd.f32 %v672_v4, %v543_v62 }
 0x312   :  { %679 = vst.msk [vmem:[#allocation4 + $0x8] sm:$0xff] %vm677_vm4, %v676_v7 }
 0x313   :  { %v670_v47 = vpop.permute.xlu1 %669 }
 0x314   :  { %v675_v14 = vadd.f32 %v670_v47, %v542_v12 }
 0x316   :  { %678 = vst.msk [vmem:[#allocation4] sm:$0xff] %vm677_vm4, %v675_v14 }
 0x319   :  { %v750_v24 = vld [vmem:[#allocation4 + $0x8] sm:$0xff] }
 0x31a   :  { %v762_v63 = vmul.f32 %v759_v9, %v750_v24 }
 0x31d   :  { %v749_v19 = vld [vmem:[#allocation4] sm:$0xff] }
 0x31e   :  { %v761_v21 = vmul.f32 %v754_v53, %v749_v19 }
 0x31f   :  { %v937_v17 = vpop.permute.xlu1 %936 }
 0x322   :  { %v891_v15 = vpop.permute.xlu0 %890 }
 0x323   :  { %v895_v0 = vadd.f32 %v891_v15, %v762_v63  ;;  %v942_v3 = vpop.permute.xlu1 %941 }
 0x325   :  { %898 = vst.msk [vmem:[#allocation4 + $0x8] sm:$0xff] %vm896_vm5, %v895_v0 }
 0x327   :  { %v889_v5 = vpop.permute.xlu1 %888 }
 0x328   :  { %v894_v28 = vadd.f32 %v889_v5, %v761_v21 }
 0x32a   :  { %897 = vst.msk [vmem:[#allocation4] sm:$0xff] %vm896_vm5, %v894_v28 }
 0x32c   :  { %v909_v31 = vld [vmem:[#allocation4 + $0x8] sm:$0xff] }
 0x32d   :  { %v921_v48 = vmul.f32 %v918_v57, %v909_v31  ;;  %v945_v46 = vmul.f32 %v942_v3, %v909_v31 }
 0x32f   :  { %v923_v42 = vmax.f32 %v921_v48, 0.0  ;;  %v947_v43 = vmax.f32 %v945_v46, 0.0  ;;  %v961_v18 = vpop.permute.xlu0 %960 }
 0x331   :  { %925 = vst.msk [vmem:[#allocation5 + $0x8] sm:$0xff] %vm223_vm2, %v923_v42  ;;  %v908_v54 = vld [vmem:[#allocation4] sm:$0xff]  ;;  %v966_v11 = vpop.permute.xlu1 %965 }
 0x332   :  { %949 = vst.msk [vmem:[#allocation5 + $0x8] sm:$0xff] %vm458_vm3, %v947_v43  ;;  %v920_v59 = vmul.f32 %v913_v16, %v908_v54  ;;  %v944_v37 = vmul.f32 %v937_v17, %v908_v54  ;;  %v968_v41 = vmul.f32 %v961_v18, %v908_v54  ;;  %v969_v56 = vmul.f32 %v966_v11, %v909_v31 }
 0x334   :  { %v922_v55 = vmax.f32 %v920_v59, 0.0  ;;  %v946_v44 = vmax.f32 %v944_v37, 0.0  ;;  %v971_v29 = vmax.f32 %v969_v56, 0.0  ;;  %v990_v30 = vpop.permute.xlu0 %989  ;;  %v970_v50 = vmax.f32 %v968_v41, 0.0 }
 0x335   :  { %v993_v32 = vmul.f32 %v990_v30, %v909_v31 }
 0x336   :  { %924 = vst.msk [vmem:[#allocation5] sm:$0xff] %vm223_vm2, %v922_v55  ;;  %v985_v51 = vpop.permute.xlu1 %984 }
 0x337   :  { %973 = vst.msk [vmem:[#allocation5 + $0x8] sm:$0xff] %vm677_vm4, %v971_v29  ;;  %v995_v38 = vmax.f32 %v993_v32, 0.0  ;;  %v992_v40 = vmul.f32 %v985_v51, %v908_v54 }
 0x338   :  { %948 = vst.msk [vmem:[#allocation5] sm:$0xff] %vm458_vm3, %v946_v44 }
 0x339   :  { %972 = vst.msk [vmem:[#allocation5] sm:$0xff] %vm677_vm4, %v970_v50  ;;  %v994_v13 = vmax.f32 %v992_v40, 0.0 }
 0x33a   :  { %997 = vst.msk [vmem:[#allocation5 + $0x8] sm:$0xff] %vm896_vm5, %v995_v38 }
 0x33b   :  { %996 = vst.msk [vmem:[#allocation5] sm:$0xff] %vm896_vm5, %v994_v13 }
 0x33c   :  { %1317 = shalt.err (!%p1314_p4)
}
 0x33d   :  { %s1341_s9 = smov 128  }
 0x33e   :  { %1009 = dma.vmem_to_hbm [thread:$0]  %s1004_s7, 256, %s1900_s4, [#allocation6], %s1341_s9, %s1341_s9, %s1337_s3  }
 0x33f   :  { %1326 = dma.done.wait [#allocation6], 256  }
 0x340   :  { %1327 = vsyncadd [#allocation6], 4294967040 }
 0x341   :  { %1013 = vsyncpa [#allocation6], 1 }

</bundles_post_ra>
